<compile_context>
chip_gen: v7x
topology: tpu7x:2x2x1
jax: 0.10.0
libtpu: 0.0.40
codegen_flags: <defaults>
</compile_context>

<pallas_src>
import functools
import math

import jax
import jax.numpy as jnp
from jax import lax
from jax.experimental import pallas as pl
from jax.experimental.pallas import tpu as pltpu

LEAKY_SLOPE = 0.2  # TODO(synk): ConvBlock source not provided; LeakyReLU(0.2) default assumed.
BN_EPS = 1e-5      # TODO(synk): bn_mode ('old'/'default') semantics unknown; standard BatchNorm2d used.


def _round_up(x, m):
    return (x + m - 1) // m * m


def _apply_act(r, act):
    if act == "leakyrelu":
        return jnp.where(r > 0, r, LEAKY_SLOPE * r)
    if act == "sigmoid":
        return 1.0 / (1.0 + jnp.exp(-r))
    return r  # 'linear'


# ------------------------------------------------------------------------ Pallas kernels
def _mm_bias_act_kernel(a_ref, b_ref, bias_ref, y_ref, *, act):
    # Single collapsed K block: act(A @ W + b); bf16 operands, f32 accumulate + epilogue.
    y = jnp.dot(a_ref[...], b_ref[...], preferred_element_type=jnp.float32) + bias_ref[...]
    y_ref[...] = _apply_act(y, act).astype(y_ref.dtype)


def _mm_bias_stats_kernel(a_ref, b_ref, bias_ref, y_ref, stats_ref):
    # Conv + bias; additionally accumulate per-channel sum / sum-of-squares (for the
    # following training-mode BatchNorm) across M tiles into a resident (2, Np) output.
    m = pl.program_id(0)
    y = jnp.dot(a_ref[...], b_ref[...], preferred_element_type=jnp.float32) + bias_ref[...]

    @pl.when(m == 0)
    def _():
        stats_ref[...] = jnp.zeros_like(stats_ref)

    upd = jnp.concatenate(
        [jnp.sum(y, axis=0, keepdims=True), jnp.sum(y * y, axis=0, keepdims=True)], axis=0)
    stats_ref[...] = stats_ref[...] + upd
    y_ref[...] = y.astype(y_ref.dtype)


def _scale_shift_act_kernel(y_ref, sc_ref, sh_ref, o_ref, *, act):
    # Fused BN-normalize (precomputed per-channel scale/shift) + activation.
    r = y_ref[...].astype(jnp.float32) * sc_ref[...] + sh_ref[...]
    o_ref[...] = _apply_act(r, act).astype(o_ref.dtype)


# ------------------------------------------------------------------------- kernel wrappers
def _pick_m_tiling(M):
    if M <= 512:
        Mp = _round_up(M, 8)
        return Mp, Mp          # single M tile: no per-step grid overhead
    TM = 256
    return _round_up(M, TM), TM


def fused_matmul(a, wmat, bias_pad, *, act="linear", with_stats=False):
    """act(a @ wmat + bias) on the MXU.

    a        : (M, K)   activation slab (cast to bf16 here).
    wmat     : (Kp, Np) bf16 weight, pre-padded at init (Kp, Np multiples of 128).
    bias_pad : (1, Np)  f32 bias, pre-padded at init.
    Returns (y_pad, Mp) or ((y_pad, stats), Mp); y_pad (Mp, Np) bf16, stats (2, Np) f32.
    """
    M, K = a.shape
    Kp, Np = wmat.shape
    Mp, TM = _pick_m_tiling(M)
    if (Mp, Kp) != (M, K):
        a = jnp.pad(a, ((0, Mp - M), (0, Kp - K)))
    a = a.astype(jnp.bfloat16)
    nm = Mp // TM

    a_spec = pl.BlockSpec((TM, Kp), lambda m: (m, 0))
    b_spec = pl.BlockSpec((Kp, Np), lambda m: (0, 0))
    v_spec = pl.BlockSpec((1, Np), lambda m: (0, 0))
    y_spec = pl.BlockSpec((TM, Np), lambda m: (m, 0))

    if with_stats:
        # Stats accumulate across M tiles -> M axis must run sequentially.
        y, stats = pl.pallas_call(
            _mm_bias_stats_kernel,
            out_shape=(jax.ShapeDtypeStruct((Mp, Np), jnp.bfloat16),
                       jax.ShapeDtypeStruct((2, Np), jnp.float32)),
            grid_spec=pltpu.PrefetchScalarGridSpec(
                num_scalar_prefetch=0, grid=(nm,),
                in_specs=[a_spec, b_spec, v_spec],
                out_specs=[y_spec, pl.BlockSpec((2, Np), lambda m: (0, 0))]),
            compiler_params=pltpu.CompilerParams(dimension_semantics=("arbitrary",)),
        )(a, wmat, bias_pad)
        return (y, stats), Mp

    y = pl.pallas_call(
        functools.partial(_mm_bias_act_kernel, act=act),
        out_shape=jax.ShapeDtypeStruct((Mp, Np), jnp.bfloat16),
        grid_spec=pltpu.PrefetchScalarGridSpec(
            num_scalar_prefetch=0, grid=(nm,),
            in_specs=[a_spec, b_spec, v_spec],
            out_specs=y_spec),
        compiler_params=pltpu.CompilerParams(dimension_semantics=("parallel",)),
    )(a, wmat, bias_pad)
    return y, Mp


def scale_shift_act(y, scale_pad, shift_pad, *, act):
    Mp, Np = y.shape
    TM = Mp if Mp <= 512 else 256
    nm = Mp // TM
    return pl.pallas_call(
        functools.partial(_scale_shift_act_kernel, act=act),
        out_shape=jax.ShapeDtypeStruct((Mp, Np), jnp.bfloat16),
        grid_spec=pltpu.PrefetchScalarGridSpec(
            num_scalar_prefetch=0, grid=(nm,),
            in_specs=[pl.BlockSpec((TM, Np), lambda m: (m, 0)),
                      pl.BlockSpec((1, Np), lambda m: (0, 0)),
                      pl.BlockSpec((1, Np), lambda m: (0, 0))],
            out_specs=pl.BlockSpec((TM, Np), lambda m: (m, 0))),
        compiler_params=pltpu.CompilerParams(dimension_semantics=("parallel",)),
    )(y, scale_pad, shift_pad)


# ------------------------------------------------------------------------------- ConvBlock
def conv_block_forward(x, p):
    """ConvBlock: Conv2d(3x3, stride, pad=1, reflect) -> [BatchNorm2d] -> act -> [Dropout].

    x: (N, H, W, Cin) bf16 channels-last.
    TODO(synk): ConvBlock source not provided; Conv->BN->LeakyReLU(0.2)->Dropout assumed.
    TODO(synk): Dropout (use_dropout=True) applied as identity (eval semantics; train-mode
                random drop has no deterministic reference).
    """
    N, H, W, Cin = x.shape
    k, s, pad = p["ksize"], p["stride"], p["pad"]
    Ho = (H + 2 * pad - k) // s + 1
    Wo = (W + 2 * pad - k) // s + 1
    mode = "reflect" if p["padding_mode"] == "reflect" else "constant"
    xp = jnp.pad(x, ((0, 0), (pad, pad), (pad, pad), (0, 0)), mode=mode)
    # k*k strided taps at output resolution, concatenated on the lane (channel) axis:
    # A[(n,ho,wo), (dy,dx,ci)] -- no transposes, only k*k * out_size * Cin elements.
    taps = [xp[:, dy:dy + s * (Ho - 1) + 1:s, dx:dx + s * (Wo - 1) + 1:s, :]
            for dy in range(k) for dx in range(k)]
    a = jnp.concatenate(taps, axis=-1).reshape(N * Ho * Wo, k * k * Cin)
    M = N * Ho * Wo
    cout = p["cout"]

    if p["use_bn"]:
        (y, stats), Mp = fused_matmul(a, p["wmat"], p["bias_pad"], with_stats=True)
        # Training-mode batch statistics (fresh torch module => train() => batch stats).
        # Padded A rows are exactly zero => their conv output equals the bias exactly;
        # subtract that contribution so stats match the un-padded activation.
        npad = float(Mp - M)
        s1 = stats[0, :cout] - npad * p["bias"]
        s2 = stats[1, :cout] - npad * p["bias"] * p["bias"]
        mean = s1 / M
        var = jnp.maximum(s2 / M - mean * mean, 0.0)      # biased variance, as torch BN
        scale = p["gamma"] * lax.rsqrt(var + BN_EPS)
        shift = p["beta"] - mean * scale
        Np = y.shape[1]
        scale_pad = jnp.zeros((1, Np), jnp.float32).at[0, :cout].set(scale)
        shift_pad = jnp.zeros((1, Np), jnp.float32).at[0, :cout].set(shift)
        y = scale_shift_act(y, scale_pad, shift_pad, act=p["act"])
    else:
        y, Mp = fused_matmul(a, p["wmat"], p["bias_pad"], act=p["act"])

    if (Mp, y.shape[1]) != (M, cout):
        y = y[:M, :cout]
    return y.reshape(N, Ho, Wo, cout)


# ------------------------------------------------------------------------------ parameters
def _conv_block_params(key, cin, cout, *, ksize=3, stride=1, pad=1, use_bn=True,
                       act="leakyrelu", padding_mode="reflect"):
    kw, kb = jax.random.split(key)
    fan_in = cin * ksize * ksize
    bound = 1.0 / math.sqrt(fan_in)
    w = jax.random.uniform(kw, (cout, cin, ksize, ksize), jnp.float32, -bound, bound)
    b = jax.random.uniform(kb, (cout,), jnp.float32, -bound, bound)
    K = ksize * ksize * cin
    Kp, Np = _round_up(K, 128), _round_up(cout, 128)
    # Pre-packed (dy, dx, ci) x cout weight matrix, padded ONCE, stored bf16.
    wmat = jnp.zeros((Kp, Np), jnp.float32).at[:K, :cout].set(
        w.transpose(2, 3, 1, 0).reshape(K, cout))
    p = dict(wmat=wmat.astype(jnp.bfloat16),
             bias=b,
             bias_pad=jnp.zeros((1, Np), jnp.float32).at[0, :cout].set(b),
             cout=cout, ksize=ksize, stride=stride, pad=pad,
             use_bn=use_bn, act=act, padding_mode=padding_mode)
    if use_bn:
        p["gamma"] = jnp.ones((cout,), jnp.float32)
        p["beta"] = jnp.zeros((cout,), jnp.float32)
    return p


def _linear_params(key, fin, fout=1):
    kw, kb = jax.random.split(key)
    bound = 1.0 / math.sqrt(fin)
    w = jax.random.uniform(kw, (fin, fout), jnp.float32, -bound, bound)
    b = jax.random.uniform(kb, (fout,), jnp.float32, -bound, bound)
    Kp, Np = _round_up(fin, 128), _round_up(fout, 128)
    wmat = jnp.zeros((Kp, Np), jnp.float32).at[:fin, :fout].set(w)
    return dict(wmat=wmat.astype(jnp.bfloat16),
                bias_pad=jnp.zeros((1, Np), jnp.float32).at[0, :fout].set(b),
                fout=fout)


def _conv_stack_params(key, cin0, base, n_layers, *, padding_mode, use_bn_first_conv):
    keys = jax.random.split(key, n_layers)
    blocks, cin = [], cin0
    for i in range(n_layers):
        cout = base * (2 ** i)
        blocks.append(_conv_block_params(
            keys[i], cin, cout, ksize=3, stride=2, pad=1,
            use_bn=(use_bn_first_conv if i == 0 else True),
            act="leakyrelu", padding_mode=padding_mode))
        cin = cout
    return blocks


def init_basic_patch_discriminator_params(key, img_size, base_channels=16, n_layers=4,
                                          use_sigmoid=True, padding_mode="reflect",
                                          use_bn_first_conv=False):
    cin0, H, W = img_size
    kb, kbl, kp, kpl = jax.random.split(key, 4)
    final_act = "sigmoid" if use_sigmoid else "linear"

    # --- BasicDiscriminator (DCGAN head) ---
    basic_convs = _conv_stack_params(kb, cin0, base_channels, n_layers,
                                     padding_mode=padding_mode,
                                     use_bn_first_conv=use_bn_first_conv)
    ds_h, ds_w = H, W
    for _ in range(n_layers):
        ds_h = math.ceil((ds_h - 2 + 2 * 1) / 2)
        ds_w = math.ceil((ds_w - 2 + 2 * 1) / 2)
    feat_c = base_channels * 2 ** (n_layers - 1)
    # NOTE: the Linear weight is laid out for the NHWC flatten order (h, w, c); this is a
    # fixed permutation of the torch NCHW-flatten weight rows (functionally equivalent init).
    basic_l1 = _linear_params(kbl, feat_c * ds_h * ds_w, 1)

    # --- PatchDiscriminator (PatchGAN head) ---
    patch_convs = _conv_stack_params(kp, cin0, base_channels, n_layers,
                                     padding_mode=padding_mode,
                                     use_bn_first_conv=use_bn_first_conv)
    patch_l1 = _conv_block_params(kpl, feat_c, 1, ksize=3, stride=1, pad=1,
                                  use_bn=False, act=final_act, padding_mode=padding_mode)

    return dict(basic=dict(convs=basic_convs, l1=basic_l1, final_act=final_act),
                patch=dict(convs=patch_convs, l1=patch_l1))


# --------------------------------------------------------------------------------- forward
def basic_discriminator_forward(x, params):
    h = x
    for p in params["convs"]:
        h = conv_block_forward(h, p)
    B = h.shape[0]
    hflat = h.reshape(B, -1)                         # NHWC flatten (see weight-layout note)
    y, _ = fused_matmul(hflat, params["l1"]["wmat"], params["l1"]["bias_pad"],
                        act=params["final_act"])
    return y[:B, :params["l1"]["fout"]].astype(jnp.float32)


def patch_discriminator_forward(x, params):
    h = x
    for p in params["convs"]:
        h = conv_block_forward(h, p)
    h = conv_block_forward(h, params["l1"])
    return jnp.transpose(h, (0, 3, 1, 2)).astype(jnp.float32)   # back to NCHW, like torch


def basic_patch_discriminator_forward(x_nchw, params):
    # Single NCHW->NHWC relayout at the module boundary; bf16 activations downstream.
    x = jnp.transpose(x_nchw, (0, 2, 3, 1)).astype(jnp.bfloat16)
    x1 = basic_discriminator_forward(x, params["basic"])
    x2 = patch_discriminator_forward(x, params["patch"])
    return x1, x2


# ------------------------------------------------------------------------------------ main
if __name__ == "__main__":
    # Small config consistent with the module. n_layers=3 keeps every reflect-padded
    # feature map >= 2x2 (with n_layers=4 at 16x16 the PatchDiscriminator's final conv
    # would reflect-pad a 1x1 map, which the torch reference itself rejects).
    img_size = (3, 16, 16)          # (C, H, W)
    base_channels = 16
    n_layers = 3
    batch = 2

    key = jax.random.PRNGKey(0)
    kparam, kx = jax.random.split(key)
    params = init_basic_patch_discriminator_params(
        kparam, img_size, base_channels=base_channels, n_layers=n_layers,
        use_sigmoid=True, padding_mode="reflect", use_bn_first_conv=False)
    x = jax.random.normal(kx, (batch,) + img_size, jnp.float32)   # NCHW input, like torch

    fwd = jax.jit(lambda inp: basic_patch_discriminator_forward(inp, params))
    x1, x2 = jax.block_until_ready(fwd(x))

    hf = img_size[1] // (2 ** n_layers)
    wf = img_size[2] // (2 ** n_layers)
    assert x1.shape == (batch, 1), x1.shape                 # BasicDiscriminator score
    assert x2.shape == (batch, 1, hf, wf), x2.shape         # PatchDiscriminator heat map
    assert bool(jnp.all(jnp.isfinite(x1))) and bool(jnp.all(jnp.isfinite(x2)))
    assert bool(jnp.all((x1 >= 0.0) & (x1 <= 1.0)))         # sigmoid output range
    assert bool(jnp.all((x2 >= 0.0) & (x2 <= 1.0)))
    print("KERNEL_OK")
</pallas_src>

<mosaic_0001>
module attributes {stable_mosaic.version = 11 : i64} {
  func.func @_mm_bias_act_kernel(%arg0: i32, %arg1: memref<128x128xbf16, #tpu.memory_space<vmem>>, %arg2: memref<128x128xbf16, #tpu.memory_space<vmem>>, %arg3: memref<1x128xf32, #tpu.memory_space<vmem>>, %arg4: memref<128x128xbf16, #tpu.memory_space<vmem>>) attributes {dimension_semantics = [#tpu.dimension_semantics<parallel>], iteration_bounds = array<i64: 1>, scalar_prefetch = 0 : i64, scratch_operands = 0 : i64, tpu.core_type = #tpu.core_type<tc>, window_params = [{transform_indices = @transform_0, window_bounds = array<i64: 128, 128>}, {pipeline_mode = #tpu.pipeline_mode<synchronous>, transform_indices = @transform_1, window_bounds = array<i64: 128, 128>}, {pipeline_mode = #tpu.pipeline_mode<synchronous>, transform_indices = @transform_2, window_bounds = array<i64: 1, 128>}, {transform_indices = @transform_3, window_bounds = array<i64: 128, 128>}]} {
    %c0 = arith.constant 0 : index
    %c0_0 = arith.constant 0 : index
    %0 = vector.load %arg1[%c0, %c0_0] : memref<128x128xbf16, #tpu.memory_space<vmem>>, vector<128x128xbf16>
    %c0_1 = arith.constant 0 : index
    %c0_2 = arith.constant 0 : index
    %1 = vector.load %arg2[%c0_1, %c0_2] : memref<128x128xbf16, #tpu.memory_space<vmem>>, vector<128x128xbf16>
    %cst = arith.constant dense<0.000000e+00> : vector<128x128xf32>
    %2 = tpu.matmul %0, %1, %cst {dimension_numbers = #tpu.dot_dimension_numbers<[1], [0], [0], [1], [0, 0, 1, 1], [], []>} : vector<128x128xbf16>, vector<128x128xbf16>, vector<128x128xf32> -> vector<128x128xf32>
    %c0_3 = arith.constant 0 : index
    %c0_4 = arith.constant 0 : index
    %3 = vector.load %arg3[%c0_3, %c0_4] : memref<1x128xf32, #tpu.memory_space<vmem>>, vector<1x128xf32>
    %4 = vector.broadcast %3 : vector<1x128xf32> to vector<128x128xf32>
    %5 = arith.addf %2, %4 : vector<128x128xf32>
    %cst_5 = arith.constant 0.000000e+00 : f32
    %6 = vector.broadcast %cst_5 : f32 to vector<128x128xf32>
    %7 = arith.cmpf ogt, %5, %6 : vector<128x128xf32>
    %cst_6 = arith.constant 2.000000e-01 : f32
    %8 = vector.broadcast %cst_6 : f32 to vector<128x128xf32>
    %9 = arith.mulf %8, %5 : vector<128x128xf32>
    %10 = arith.select %7, %5, %9 : vector<128x128xi1>, vector<128x128xf32>
    %11 = arith.truncf %10 : vector<128x128xf32> to vector<128x128xbf16>
    %c0_7 = arith.constant 0 : index
    %c0_8 = arith.constant 0 : index
    %12 = vector.load %arg4[%c0_7, %c0_8] : memref<128x128xbf16, #tpu.memory_space<vmem>>, vector<128x128xbf16>
    tpu.vector_store %arg4[%c0_7, %c0_8], %11 {strides = array<i32>} : memref<128x128xbf16, #tpu.memory_space<vmem>>, vector<128x128xbf16>,
    return
  }
  func.func @transform_0(%arg0: i32) -> (i32, i32) {
    %c0_i32 = arith.constant 0 : i32
    %c0_i32_0 = arith.constant 0 : i32
    return %arg0, %c0_i32 : i32, i32
  }
  func.func @transform_1(%arg0: i32) -> (i32, i32) {
    %c0_i32 = arith.constant 0 : i32
    %c0_i32_0 = arith.constant 0 : i32
    %c0_i32_1 = arith.constant 0 : i32
    return %c0_i32, %c0_i32_0 : i32, i32
  }
  func.func @transform_2(%arg0: i32) -> (i32, i32) {
    %c0_i32 = arith.constant 0 : i32
    %c0_i32_0 = arith.constant 0 : i32
    %c0_i32_1 = arith.constant 0 : i32
    return %c0_i32, %c0_i32_0 : i32, i32
  }
  func.func @transform_3(%arg0: i32) -> (i32, i32) {
    %c0_i32 = arith.constant 0 : i32
    %c0_i32_0 = arith.constant 0 : i32
    return %arg0, %c0_i32 : i32, i32
  }
}

module attributes {stable_mosaic.version = 11 : i64} {
  func.func @_mm_bias_stats_kernel(%arg0: i32, %arg1: memref<32x256xbf16, #tpu.memory_space<vmem>>, %arg2: memref<256x128xbf16, #tpu.memory_space<vmem>>, %arg3: memref<1x128xf32, #tpu.memory_space<vmem>>, %arg4: memref<32x128xbf16, #tpu.memory_space<vmem>>, %arg5: memref<2x128xf32, #tpu.memory_space<vmem>>) attributes {dimension_semantics = [#tpu.dimension_semantics<arbitrary>], iteration_bounds = array<i64: 1>, scalar_prefetch = 0 : i64, scratch_operands = 0 : i64, tpu.core_type = #tpu.core_type<tc>, window_params = [{transform_indices = @transform_0, window_bounds = array<i64: 32, 256>}, {pipeline_mode = #tpu.pipeline_mode<synchronous>, transform_indices = @transform_1, window_bounds = array<i64: 256, 128>}, {pipeline_mode = #tpu.pipeline_mode<synchronous>, transform_indices = @transform_2, window_bounds = array<i64: 1, 128>}, {transform_indices = @transform_3, window_bounds = array<i64: 32, 128>}, {pipeline_mode = #tpu.pipeline_mode<synchronous>, transform_indices = @transform_4, window_bounds = array<i64: 2, 128>}]} {
    %c0 = arith.constant 0 : index
    %c0_0 = arith.constant 0 : index
    %0 = vector.load %arg1[%c0, %c0_0] : memref<32x256xbf16, #tpu.memory_space<vmem>>, vector<32x256xbf16>
    %c0_1 = arith.constant 0 : index
    %c0_2 = arith.constant 0 : index
    %1 = vector.load %arg2[%c0_1, %c0_2] : memref<256x128xbf16, #tpu.memory_space<vmem>>, vector<256x128xbf16>
    %cst = arith.constant dense<0.000000e+00> : vector<32x128xf32>
    %2 = tpu.matmul %0, %1, %cst {dimension_numbers = #tpu.dot_dimension_numbers<[1], [0], [0], [1], [0, 0, 1, 1], [], []>} : vector<32x256xbf16>, vector<256x128xbf16>, vector<32x128xf32> -> vector<32x128xf32>
    %c0_3 = arith.constant 0 : index
    %c0_4 = arith.constant 0 : index
    %3 = vector.load %arg3[%c0_3, %c0_4] : memref<1x128xf32, #tpu.memory_space<vmem>>, vector<1x128xf32>
    %4 = vector.broadcast %3 : vector<1x128xf32> to vector<32x128xf32>
    %5 = arith.addf %2, %4 : vector<32x128xf32>
    %c0_i32 = arith.constant 0 : i32
    %6 = arith.cmpi eq, %arg0, %c0_i32 : i32
    %7 = arith.extui %6 : i1 to i32
    %c0_i32_5 = arith.constant 0 : i32
    %8 = arith.cmpi ne, %7, %c0_i32_5 : i32
    scf.if %8 {
      %cst_14 = arith.constant 0.000000e+00 : f32
      %20 = vector.broadcast %cst_14 : f32 to vector<2x128xf32>
      %c0_15 = arith.constant 0 : index
      %c0_16 = arith.constant 0 : index
      %21 = vector.load %arg5[%c0_15, %c0_16] : memref<2x128xf32, #tpu.memory_space<vmem>>, vector<2x128xf32>
      tpu.vector_store %arg5[%c0_15, %c0_16], %20 {strides = array<i32>} : memref<2x128xf32, #tpu.memory_space<vmem>>, vector<2x128xf32>,
    } else {
    }
    %cst_6 = arith.constant dense<0.000000e+00> : vector<128xf32>
    %9 = vector.multi_reduction <add>, %5, %cst_6 [0] : vector<32x128xf32> to vector<128xf32>
    %10 = vector.shape_cast %9 : vector<128xf32> to vector<1x128xf32>
    %11 = arith.mulf %5, %5 : vector<32x128xf32>
    %cst_7 = arith.constant dense<0.000000e+00> : vector<128xf32>
    %12 = vector.multi_reduction <add>, %11, %cst_7 [0] : vector<32x128xf32> to vector<128xf32>
    %13 = vector.shape_cast %12 : vector<128xf32> to vector<1x128xf32>
    %14 = tpu.concatenate %10, %13 in 0 : vector<1x128xf32>, vector<1x128xf32> -> vector<2x128xf32>
    %c0_8 = arith.constant 0 : index
    %c0_9 = arith.constant 0 : index
    %15 = vector.load %arg5[%c0_8, %c0_9] : memref<2x128xf32, #tpu.memory_space<vmem>>, vector<2x128xf32>
    %16 = arith.addf %15, %14 : vector<2x128xf32>
    %c0_10 = arith.constant 0 : index
    %c0_11 = arith.constant 0 : index
    %17 = vector.load %arg5[%c0_10, %c0_11] : memref<2x128xf32, #tpu.memory_space<vmem>>, vector<2x128xf32>
    tpu.vector_store %arg5[%c0_10, %c0_11], %16 {strides = array<i32>} : memref<2x128xf32, #tpu.memory_space<vmem>>, vector<2x128xf32>,
    %18 = arith.truncf %5 : vector<32x128xf32> to vector<32x128xbf16>
    %c0_12 = arith.constant 0 : index
    %c0_13 = arith.constant 0 : index
    %19 = vector.load %arg4[%c0_12, %c0_13] : memref<32x128xbf16, #tpu.memory_space<vmem>>, vector<32x128xbf16>
    tpu.vector_store %arg4[%c0_12, %c0_13], %18 {strides = array<i32>} : memref<32x128xbf16, #tpu.memory_space<vmem>>, vector<32x128xbf16>,
    return
  }
  func.func @transform_0(%arg0: i32) -> (i32, i32) {
    %c0_i32 = arith.constant 0 : i32
    %c0_i32_0 = arith.constant 0 : i32
    return %arg0, %c0_i32 : i32, i32
  }
  func.func @transform_1(%arg0: i32) -> (i32, i32) {
    %c0_i32 = arith.constant 0 : i32
    %c0_i32_0 = arith.constant 0 : i32
    %c0_i32_1 = arith.constant 0 : i32
    return %c0_i32, %c0_i32_0 : i32, i32
  }
  func.func @transform_2(%arg0: i32) -> (i32, i32) {
    %c0_i32 = arith.constant 0 : i32
    %c0_i32_0 = arith.constant 0 : i32
    %c0_i32_1 = arith.constant 0 : i32
    return %c0_i32, %c0_i32_0 : i32, i32
  }
  func.func @transform_3(%arg0: i32) -> (i32, i32) {
    %c0_i32 = arith.constant 0 : i32
    %c0_i32_0 = arith.constant 0 : i32
    return %arg0, %c0_i32 : i32, i32
  }
  func.func @transform_4(%arg0: i32) -> (i32, i32) {
    %c0_i32 = arith.constant 0 : i32
    %c0_i32_0 = arith.constant 0 : i32
    %c0_i32_1 = arith.constant 0 : i32
    return %c0_i32, %c0_i32_0 : i32, i32
  }
}

module attributes {stable_mosaic.version = 11 : i64} {
  func.func @_scale_shift_act_kernel(%arg0: i32, %arg1: memref<32x128xbf16, #tpu.memory_space<vmem>>, %arg2: memref<1x128xf32, #tpu.memory_space<vmem>>, %arg3: memref<1x128xf32, #tpu.memory_space<vmem>>, %arg4: memref<32x128xbf16, #tpu.memory_space<vmem>>) attributes {dimension_semantics = [#tpu.dimension_semantics<parallel>], iteration_bounds = array<i64: 1>, scalar_prefetch = 0 : i64, scratch_operands = 0 : i64, tpu.core_type = #tpu.core_type<tc>, window_params = [{transform_indices = @transform_0, window_bounds = array<i64: 32, 128>}, {pipeline_mode = #tpu.pipeline_mode<synchronous>, transform_indices = @transform_1, window_bounds = array<i64: 1, 128>}, {pipeline_mode = #tpu.pipeline_mode<synchronous>, transform_indices = @transform_2, window_bounds = array<i64: 1, 128>}, {transform_indices = @transform_3, window_bounds = array<i64: 32, 128>}]} {
    %c0 = arith.constant 0 : index
    %c0_0 = arith.constant 0 : index
    %0 = vector.load %arg1[%c0, %c0_0] : memref<32x128xbf16, #tpu.memory_space<vmem>>, vector<32x128xbf16>
    %1 = arith.extf %0 : vector<32x128xbf16> to vector<32x128xf32>
    %c0_1 = arith.constant 0 : index
    %c0_2 = arith.constant 0 : index
    %2 = vector.load %arg2[%c0_1, %c0_2] : memref<1x128xf32, #tpu.memory_space<vmem>>, vector<1x128xf32>
    %3 = vector.broadcast %2 : vector<1x128xf32> to vector<32x128xf32>
    %4 = arith.mulf %1, %3 : vector<32x128xf32>
    %c0_3 = arith.constant 0 : index
    %c0_4 = arith.constant 0 : index
    %5 = vector.load %arg3[%c0_3, %c0_4] : memref<1x128xf32, #tpu.memory_space<vmem>>, vector<1x128xf32>
    %6 = vector.broadcast %5 : vector<1x128xf32> to vector<32x128xf32>
    %7 = arith.addf %4, %6 : vector<32x128xf32>
    %cst = arith.constant 0.000000e+00 : f32
    %8 = vector.broadcast %cst : f32 to vector<32x128xf32>
    %9 = arith.cmpf ogt, %7, %8 : vector<32x128xf32>
    %cst_5 = arith.constant 2.000000e-01 : f32
    %10 = vector.broadcast %cst_5 : f32 to vector<32x128xf32>
    %11 = arith.mulf %10, %7 : vector<32x128xf32>
    %12 = arith.select %9, %7, %11 : vector<32x128xi1>, vector<32x128xf32>
    %13 = arith.truncf %12 : vector<32x128xf32> to vector<32x128xbf16>
    %c0_6 = arith.constant 0 : index
    %c0_7 = arith.constant 0 : index
    %14 = vector.load %arg4[%c0_6, %c0_7] : memref<32x128xbf16, #tpu.memory_space<vmem>>, vector<32x128xbf16>
    tpu.vector_store %arg4[%c0_6, %c0_7], %13 {strides = array<i32>} : memref<32x128xbf16, #tpu.memory_space<vmem>>, vector<32x128xbf16>,
    return
  }
  func.func @transform_0(%arg0: i32) -> (i32, i32) {
    %c0_i32 = arith.constant 0 : i32
    %c0_i32_0 = arith.constant 0 : i32
    return %arg0, %c0_i32 : i32, i32
  }
  func.func @transform_1(%arg0: i32) -> (i32, i32) {
    %c0_i32 = arith.constant 0 : i32
    %c0_i32_0 = arith.constant 0 : i32
    %c0_i32_1 = arith.constant 0 : i32
    return %c0_i32, %c0_i32_0 : i32, i32
  }
  func.func @transform_2(%arg0: i32) -> (i32, i32) {
    %c0_i32 = arith.constant 0 : i32
    %c0_i32_0 = arith.constant 0 : i32
    %c0_i32_1 = arith.constant 0 : i32
    return %c0_i32, %c0_i32_0 : i32, i32
  }
  func.func @transform_3(%arg0: i32) -> (i32, i32) {
    %c0_i32 = arith.constant 0 : i32
    %c0_i32_0 = arith.constant 0 : i32
    return %arg0, %c0_i32 : i32, i32
  }
}

module attributes {stable_mosaic.version = 11 : i64} {
  func.func @_mm_bias_stats_kernel(%arg0: i32, %arg1: memref<8x384xbf16, #tpu.memory_space<vmem>>, %arg2: memref<384x128xbf16, #tpu.memory_space<vmem>>, %arg3: memref<1x128xf32, #tpu.memory_space<vmem>>, %arg4: memref<8x128xbf16, #tpu.memory_space<vmem>>, %arg5: memref<2x128xf32, #tpu.memory_space<vmem>>) attributes {dimension_semantics = [#tpu.dimension_semantics<arbitrary>], iteration_bounds = array<i64: 1>, scalar_prefetch = 0 : i64, scratch_operands = 0 : i64, tpu.core_type = #tpu.core_type<tc>, window_params = [{transform_indices = @transform_0, window_bounds = array<i64: 8, 384>}, {pipeline_mode = #tpu.pipeline_mode<synchronous>, transform_indices = @transform_1, window_bounds = array<i64: 384, 128>}, {pipeline_mode = #tpu.pipeline_mode<synchronous>, transform_indices = @transform_2, window_bounds = array<i64: 1, 128>}, {transform_indices = @transform_3, window_bounds = array<i64: 8, 128>}, {pipeline_mode = #tpu.pipeline_mode<synchronous>, transform_indices = @transform_4, window_bounds = array<i64: 2, 128>}]} {
    %c0 = arith.constant 0 : index
    %c0_0 = arith.constant 0 : index
    %0 = vector.load %arg1[%c0, %c0_0] : memref<8x384xbf16, #tpu.memory_space<vmem>>, vector<8x384xbf16>
    %c0_1 = arith.constant 0 : index
    %c0_2 = arith.constant 0 : index
    %1 = vector.load %arg2[%c0_1, %c0_2] : memref<384x128xbf16, #tpu.memory_space<vmem>>, vector<384x128xbf16>
    %cst = arith.constant dense<0.000000e+00> : vector<8x128xf32>
    %2 = tpu.matmul %0, %1, %cst {dimension_numbers = #tpu.dot_dimension_numbers<[1], [0], [0], [1], [0, 0, 1, 1], [], []>} : vector<8x384xbf16>, vector<384x128xbf16>, vector<8x128xf32> -> vector<8x128xf32>
    %c0_3 = arith.constant 0 : index
    %c0_4 = arith.constant 0 : index
    %3 = vector.load %arg3[%c0_3, %c0_4] : memref<1x128xf32, #tpu.memory_space<vmem>>, vector<1x128xf32>
    %4 = vector.broadcast %3 : vector<1x128xf32> to vector<8x128xf32>
    %5 = arith.addf %2, %4 : vector<8x128xf32>
    %c0_i32 = arith.constant 0 : i32
    %6 = arith.cmpi eq, %arg0, %c0_i32 : i32
    %7 = arith.extui %6 : i1 to i32
    %c0_i32_5 = arith.constant 0 : i32
    %8 = arith.cmpi ne, %7, %c0_i32_5 : i32
    scf.if %8 {
      %cst_14 = arith.constant 0.000000e+00 : f32
      %20 = vector.broadcast %cst_14 : f32 to vector<2x128xf32>
      %c0_15 = arith.constant 0 : index
      %c0_16 = arith.constant 0 : index
      %21 = vector.load %arg5[%c0_15, %c0_16] : memref<2x128xf32, #tpu.memory_space<vmem>>, vector<2x128xf32>
      tpu.vector_store %arg5[%c0_15, %c0_16], %20 {strides = array<i32>} : memref<2x128xf32, #tpu.memory_space<vmem>>, vector<2x128xf32>,
    } else {
    }
    %cst_6 = arith.constant dense<0.000000e+00> : vector<128xf32>
    %9 = vector.multi_reduction <add>, %5, %cst_6 [0] : vector<8x128xf32> to vector<128xf32>
    %10 = vector.shape_cast %9 : vector<128xf32> to vector<1x128xf32>
    %11 = arith.mulf %5, %5 : vector<8x128xf32>
    %cst_7 = arith.constant dense<0.000000e+00> : vector<128xf32>
    %12 = vector.multi_reduction <add>, %11, %cst_7 [0] : vector<8x128xf32> to vector<128xf32>
    %13 = vector.shape_cast %12 : vector<128xf32> to vector<1x128xf32>
    %14 = tpu.concatenate %10, %13 in 0 : vector<1x128xf32>, vector<1x128xf32> -> vector<2x128xf32>
    %c0_8 = arith.constant 0 : index
    %c0_9 = arith.constant 0 : index
    %15 = vector.load %arg5[%c0_8, %c0_9] : memref<2x128xf32, #tpu.memory_space<vmem>>, vector<2x128xf32>
    %16 = arith.addf %15, %14 : vector<2x128xf32>
    %c0_10 = arith.constant 0 : index
    %c0_11 = arith.constant 0 : index
    %17 = vector.load %arg5[%c0_10, %c0_11] : memref<2x128xf32, #tpu.memory_space<vmem>>, vector<2x128xf32>
    tpu.vector_store %arg5[%c0_10, %c0_11], %16 {strides = array<i32>} : memref<2x128xf32, #tpu.memory_space<vmem>>, vector<2x128xf32>,
    %18 = arith.truncf %5 : vector<8x128xf32> to vector<8x128xbf16>
    %c0_12 = arith.constant 0 : index
    %c0_13 = arith.constant 0 : index
    %19 = vector.load %arg4[%c0_12, %c0_13] : memref<8x128xbf16, #tpu.memory_space<vmem>>, vector<8x128xbf16>
    tpu.vector_store %arg4[%c0_12, %c0_13], %18 {strides = array<i32>} : memref<8x128xbf16, #tpu.memory_space<vmem>>, vector<8x128xbf16>,
    return
  }
  func.func @transform_0(%arg0: i32) -> (i32, i32) {
    %c0_i32 = arith.constant 0 : i32
    %c0_i32_0 = arith.constant 0 : i32
    return %arg0, %c0_i32 : i32, i32
  }
  func.func @transform_1(%arg0: i32) -> (i32, i32) {
    %c0_i32 = arith.constant 0 : i32
    %c0_i32_0 = arith.constant 0 : i32
    %c0_i32_1 = arith.constant 0 : i32
    return %c0_i32, %c0_i32_0 : i32, i32
  }
  func.func @transform_2(%arg0: i32) -> (i32, i32) {
    %c0_i32 = arith.constant 0 : i32
    %c0_i32_0 = arith.constant 0 : i32
    %c0_i32_1 = arith.constant 0 : i32
    return %c0_i32, %c0_i32_0 : i32, i32
  }
  func.func @transform_3(%arg0: i32) -> (i32, i32) {
    %c0_i32 = arith.constant 0 : i32
    %c0_i32_0 = arith.constant 0 : i32
    return %arg0, %c0_i32 : i32, i32
  }
  func.func @transform_4(%arg0: i32) -> (i32, i32) {
    %c0_i32 = arith.constant 0 : i32
    %c0_i32_0 = arith.constant 0 : i32
    %c0_i32_1 = arith.constant 0 : i32
    return %c0_i32, %c0_i32_0 : i32, i32
  }
}

module attributes {stable_mosaic.version = 11 : i64} {
  func.func @_scale_shift_act_kernel(%arg0: i32, %arg1: memref<8x128xbf16, #tpu.memory_space<vmem>>, %arg2: memref<1x128xf32, #tpu.memory_space<vmem>>, %arg3: memref<1x128xf32, #tpu.memory_space<vmem>>, %arg4: memref<8x128xbf16, #tpu.memory_space<vmem>>) attributes {dimension_semantics = [#tpu.dimension_semantics<parallel>], iteration_bounds = array<i64: 1>, scalar_prefetch = 0 : i64, scratch_operands = 0 : i64, tpu.core_type = #tpu.core_type<tc>, window_params = [{transform_indices = @transform_0, window_bounds = array<i64: 8, 128>}, {pipeline_mode = #tpu.pipeline_mode<synchronous>, transform_indices = @transform_1, window_bounds = array<i64: 1, 128>}, {pipeline_mode = #tpu.pipeline_mode<synchronous>, transform_indices = @transform_2, window_bounds = array<i64: 1, 128>}, {transform_indices = @transform_3, window_bounds = array<i64: 8, 128>}]} {
    %c0 = arith.constant 0 : index
    %c0_0 = arith.constant 0 : index
    %0 = vector.load %arg1[%c0, %c0_0] : memref<8x128xbf16, #tpu.memory_space<vmem>>, vector<8x128xbf16>
    %1 = arith.extf %0 : vector<8x128xbf16> to vector<8x128xf32>
    %c0_1 = arith.constant 0 : index
    %c0_2 = arith.constant 0 : index
    %2 = vector.load %arg2[%c0_1, %c0_2] : memref<1x128xf32, #tpu.memory_space<vmem>>, vector<1x128xf32>
    %3 = vector.broadcast %2 : vector<1x128xf32> to vector<8x128xf32>
    %4 = arith.mulf %1, %3 : vector<8x128xf32>
    %c0_3 = arith.constant 0 : index
    %c0_4 = arith.constant 0 : index
    %5 = vector.load %arg3[%c0_3, %c0_4] : memref<1x128xf32, #tpu.memory_space<vmem>>, vector<1x128xf32>
    %6 = vector.broadcast %5 : vector<1x128xf32> to vector<8x128xf32>
    %7 = arith.addf %4, %6 : vector<8x128xf32>
    %cst = arith.constant 0.000000e+00 : f32
    %8 = vector.broadcast %cst : f32 to vector<8x128xf32>
    %9 = arith.cmpf ogt, %7, %8 : vector<8x128xf32>
    %cst_5 = arith.constant 2.000000e-01 : f32
    %10 = vector.broadcast %cst_5 : f32 to vector<8x128xf32>
    %11 = arith.mulf %10, %7 : vector<8x128xf32>
    %12 = arith.select %9, %7, %11 : vector<8x128xi1>, vector<8x128xf32>
    %13 = arith.truncf %12 : vector<8x128xf32> to vector<8x128xbf16>
    %c0_6 = arith.constant 0 : index
    %c0_7 = arith.constant 0 : index
    %14 = vector.load %arg4[%c0_6, %c0_7] : memref<8x128xbf16, #tpu.memory_space<vmem>>, vector<8x128xbf16>
    tpu.vector_store %arg4[%c0_6, %c0_7], %13 {strides = array<i32>} : memref<8x128xbf16, #tpu.memory_space<vmem>>, vector<8x128xbf16>,
    return
  }
  func.func @transform_0(%arg0: i32) -> (i32, i32) {
    %c0_i32 = arith.constant 0 : i32
    %c0_i32_0 = arith.constant 0 : i32
    return %arg0, %c0_i32 : i32, i32
  }
  func.func @transform_1(%arg0: i32) -> (i32, i32) {
    %c0_i32 = arith.constant 0 : i32
    %c0_i32_0 = arith.constant 0 : i32
    %c0_i32_1 = arith.constant 0 : i32
    return %c0_i32, %c0_i32_0 : i32, i32
  }
  func.func @transform_2(%arg0: i32) -> (i32, i32) {
    %c0_i32 = arith.constant 0 : i32
    %c0_i32_0 = arith.constant 0 : i32
    %c0_i32_1 = arith.constant 0 : i32
    return %c0_i32, %c0_i32_0 : i32, i32
  }
  func.func @transform_3(%arg0: i32) -> (i32, i32) {
    %c0_i32 = arith.constant 0 : i32
    %c0_i32_0 = arith.constant 0 : i32
    return %arg0, %c0_i32 : i32, i32
  }
}

module attributes {stable_mosaic.version = 11 : i64} {
  func.func @_mm_bias_act_kernel(%arg0: i32, %arg1: memref<8x640xbf16, #tpu.memory_space<vmem>>, %arg2: memref<640x128xbf16, #tpu.memory_space<vmem>>, %arg3: memref<1x128xf32, #tpu.memory_space<vmem>>, %arg4: memref<8x128xbf16, #tpu.memory_space<vmem>>) attributes {dimension_semantics = [#tpu.dimension_semantics<parallel>], iteration_bounds = array<i64: 1>, scalar_prefetch = 0 : i64, scratch_operands = 0 : i64, tpu.core_type = #tpu.core_type<tc>, window_params = [{transform_indices = @transform_0, window_bounds = array<i64: 8, 640>}, {pipeline_mode = #tpu.pipeline_mode<synchronous>, transform_indices = @transform_1, window_bounds = array<i64: 640, 128>}, {pipeline_mode = #tpu.pipeline_mode<synchronous>, transform_indices = @transform_2, window_bounds = array<i64: 1, 128>}, {transform_indices = @transform_3, window_bounds = array<i64: 8, 128>}]} {
    %c0 = arith.constant 0 : index
    %c0_0 = arith.constant 0 : index
    %0 = vector.load %arg1[%c0, %c0_0] : memref<8x640xbf16, #tpu.memory_space<vmem>>, vector<8x640xbf16>
    %c0_1 = arith.constant 0 : index
    %c0_2 = arith.constant 0 : index
    %1 = vector.load %arg2[%c0_1, %c0_2] : memref<640x128xbf16, #tpu.memory_space<vmem>>, vector<640x128xbf16>
    %cst = arith.constant dense<0.000000e+00> : vector<8x128xf32>
    %2 = tpu.matmul %0, %1, %cst {dimension_numbers = #tpu.dot_dimension_numbers<[1], [0], [0], [1], [0, 0, 1, 1], [], []>} : vector<8x640xbf16>, vector<640x128xbf16>, vector<8x128xf32> -> vector<8x128xf32>
    %c0_3 = arith.constant 0 : index
    %c0_4 = arith.constant 0 : index
    %3 = vector.load %arg3[%c0_3, %c0_4] : memref<1x128xf32, #tpu.memory_space<vmem>>, vector<1x128xf32>
    %4 = vector.broadcast %3 : vector<1x128xf32> to vector<8x128xf32>
    %5 = arith.addf %2, %4 : vector<8x128xf32>
    %cst_5 = arith.constant 0.000000e+00 : f32
    %6 = vector.broadcast %cst_5 : f32 to vector<8x128xf32>
    %7 = arith.subf %6, %5 : vector<8x128xf32>
    %8 = math.exp %7 : vector<8x128xf32>
    %cst_6 = arith.constant 1.000000e+00 : f32
    %9 = vector.broadcast %cst_6 : f32 to vector<8x128xf32>
    %10 = arith.addf %9, %8 : vector<8x128xf32>
    %cst_7 = arith.constant 1.000000e+00 : f32
    %11 = vector.broadcast %cst_7 : f32 to vector<8x128xf32>
    %12 = arith.divf %11, %10 : vector<8x128xf32>
    %13 = arith.truncf %12 : vector<8x128xf32> to vector<8x128xbf16>
    %c0_8 = arith.constant 0 : index
    %c0_9 = arith.constant 0 : index
    %14 = vector.load %arg4[%c0_8, %c0_9] : memref<8x128xbf16, #tpu.memory_space<vmem>>, vector<8x128xbf16>
    tpu.vector_store %arg4[%c0_8, %c0_9], %13 {strides = array<i32>} : memref<8x128xbf16, #tpu.memory_space<vmem>>, vector<8x128xbf16>,
    return
  }
  func.func @transform_0(%arg0: i32) -> (i32, i32) {
    %c0_i32 = arith.constant 0 : i32
    %c0_i32_0 = arith.constant 0 : i32
    return %arg0, %c0_i32 : i32, i32
  }
  func.func @transform_1(%arg0: i32) -> (i32, i32) {
    %c0_i32 = arith.constant 0 : i32
    %c0_i32_0 = arith.constant 0 : i32
    %c0_i32_1 = arith.constant 0 : i32
    return %c0_i32, %c0_i32_0 : i32, i32
  }
  func.func @transform_2(%arg0: i32) -> (i32, i32) {
    %c0_i32 = arith.constant 0 : i32
    %c0_i32_0 = arith.constant 0 : i32
    %c0_i32_1 = arith.constant 0 : i32
    return %c0_i32, %c0_i32_0 : i32, i32
  }
  func.func @transform_3(%arg0: i32) -> (i32, i32) {
    %c0_i32 = arith.constant 0 : i32
    %c0_i32_0 = arith.constant 0 : i32
    return %arg0, %c0_i32 : i32, i32
  }
}

module attributes {stable_mosaic.version = 11 : i64} {
  func.func @_mm_bias_act_kernel(%arg0: i32, %arg1: memref<8x256xbf16, #tpu.memory_space<vmem>>, %arg2: memref<256x128xbf16, #tpu.memory_space<vmem>>, %arg3: memref<1x128xf32, #tpu.memory_space<vmem>>, %arg4: memref<8x128xbf16, #tpu.memory_space<vmem>>) attributes {dimension_semantics = [#tpu.dimension_semantics<parallel>], iteration_bounds = array<i64: 1>, scalar_prefetch = 0 : i64, scratch_operands = 0 : i64, tpu.core_type = #tpu.core_type<tc>, window_params = [{transform_indices = @transform_0, window_bounds = array<i64: 8, 256>}, {pipeline_mode = #tpu.pipeline_mode<synchronous>, transform_indices = @transform_1, window_bounds = array<i64: 256, 128>}, {pipeline_mode = #tpu.pipeline_mode<synchronous>, transform_indices = @transform_2, window_bounds = array<i64: 1, 128>}, {transform_indices = @transform_3, window_bounds = array<i64: 8, 128>}]} {
    %c0 = arith.constant 0 : index
    %c0_0 = arith.constant 0 : index
    %0 = vector.load %arg1[%c0, %c0_0] : memref<8x256xbf16, #tpu.memory_space<vmem>>, vector<8x256xbf16>
    %c0_1 = arith.constant 0 : index
    %c0_2 = arith.constant 0 : index
    %1 = vector.load %arg2[%c0_1, %c0_2] : memref<256x128xbf16, #tpu.memory_space<vmem>>, vector<256x128xbf16>
    %cst = arith.constant dense<0.000000e+00> : vector<8x128xf32>
    %2 = tpu.matmul %0, %1, %cst {dimension_numbers = #tpu.dot_dimension_numbers<[1], [0], [0], [1], [0, 0, 1, 1], [], []>} : vector<8x256xbf16>, vector<256x128xbf16>, vector<8x128xf32> -> vector<8x128xf32>
    %c0_3 = arith.constant 0 : index
    %c0_4 = arith.constant 0 : index
    %3 = vector.load %arg3[%c0_3, %c0_4] : memref<1x128xf32, #tpu.memory_space<vmem>>, vector<1x128xf32>
    %4 = vector.broadcast %3 : vector<1x128xf32> to vector<8x128xf32>
    %5 = arith.addf %2, %4 : vector<8x128xf32>
    %cst_5 = arith.constant 0.000000e+00 : f32
    %6 = vector.broadcast %cst_5 : f32 to vector<8x128xf32>
    %7 = arith.subf %6, %5 : vector<8x128xf32>
    %8 = math.exp %7 : vector<8x128xf32>
    %cst_6 = arith.constant 1.000000e+00 : f32
    %9 = vector.broadcast %cst_6 : f32 to vector<8x128xf32>
    %10 = arith.addf %9, %8 : vector<8x128xf32>
    %cst_7 = arith.constant 1.000000e+00 : f32
    %11 = vector.broadcast %cst_7 : f32 to vector<8x128xf32>
    %12 = arith.divf %11, %10 : vector<8x128xf32>
    %13 = arith.truncf %12 : vector<8x128xf32> to vector<8x128xbf16>
    %c0_8 = arith.constant 0 : index
    %c0_9 = arith.constant 0 : index
    %14 = vector.load %arg4[%c0_8, %c0_9] : memref<8x128xbf16, #tpu.memory_space<vmem>>, vector<8x128xbf16>
    tpu.vector_store %arg4[%c0_8, %c0_9], %13 {strides = array<i32>} : memref<8x128xbf16, #tpu.memory_space<vmem>>, vector<8x128xbf16>,
    return
  }
  func.func @transform_0(%arg0: i32) -> (i32, i32) {
    %c0_i32 = arith.constant 0 : i32
    %c0_i32_0 = arith.constant 0 : i32
    return %arg0, %c0_i32 : i32, i32
  }
  func.func @transform_1(%arg0: i32) -> (i32, i32) {
    %c0_i32 = arith.constant 0 : i32
    %c0_i32_0 = arith.constant 0 : i32
    %c0_i32_1 = arith.constant 0 : i32
    return %c0_i32, %c0_i32_0 : i32, i32
  }
  func.func @transform_2(%arg0: i32) -> (i32, i32) {
    %c0_i32 = arith.constant 0 : i32
    %c0_i32_0 = arith.constant 0 : i32
    %c0_i32_1 = arith.constant 0 : i32
    return %c0_i32, %c0_i32_0 : i32, i32
  }
  func.func @transform_3(%arg0: i32) -> (i32, i32) {
    %c0_i32 = arith.constant 0 : i32
    %c0_i32_0 = arith.constant 0 : i32
    return %arg0, %c0_i32 : i32, i32
  }
}

</mosaic_0001>

<bundles_post_ra>
// kernel: _lambda_.18
= control target key start
LH: loop header
LB: loop body
LE: loop exit
PB: predicated region body
PF: predicated region fallthrough
CT: control target
= control target key end

     0   :  { %s672_s1 = inlined_call_operand.vmem [shape: bf16[128,128], index: 1, kind: input, shape index: {}]   ;;  %s673_s0 = inlined_call_operand.vmem [shape: bf16[128,128], index: 0, kind: input, shape index: {}]   ;;  %s674_s2 = inlined_call_operand.vmem [shape: f32[1,128], index: 2, kind: input, shape index: {}]   ;;  %s675_s3 = inlined_call_operand.vmem [shape: bf16[128,128], index: 3, kind: output, shape index: {}]  }
   0x1   :  { %v539_v0 = vld [vmem:[%s672_s1] sm:$0xff]   ;;  %v540_v1 = vld [vmem:[%s672_s1 + $0x8] sm:$0xff]   ;;  %v541_v2 = vld [vmem:[%s672_s1 + $0x10] sm:$0xff]  }
   0x2   :  { %491 = vmatprep.subr.bf16.mxu0 %v539_v0  ;;  %523 = vmatprep.subr.bf16.mxu1 %v539_v0  ;;  %v542_v3 = vld [vmem:[%s672_s1 + $0x18] sm:$0xff]   ;;  %v547_v4 = vld [vmem:[%s673_s0] sm:$0xff]   ;;  %v544_v7 = vld [vmem:[%s672_s1 + $0x28] sm:$0xff]  }
   0x3   :  { %492 = vmatpush3.bf16.msra.mxu0 %v539_v0  ;;  %531 = vmatpush3.bf16.msra.mxu1 %v539_v0  ;;  %v548_v5 = vld [vmem:[%s673_s0 + $0x20] sm:$0xff]   ;;  %v545_v8 = vld [vmem:[%s672_s1 + $0x30] sm:$0xff]   ;;  %v546_v9 = vld [vmem:[%s672_s1 + $0x38] sm:$0xff]  }
   0x4   :  { %493 = vmatprep.subr.bf16.mxu0 %v540_v1  ;;  %524 = vmatprep.subr.bf16.mxu1 %v540_v1  ;;  %v543_v6 = vld [vmem:[%s672_s1 + $0x20] sm:$0xff]   ;;  %v549_v10 = vld [vmem:[%s673_s0 + $0x8] sm:$0xff]   ;;  %v551_v12 = vld [vmem:[%s673_s0 + $0x10] sm:$0xff]  }
   0x5   :  { %507 = vmatprep.mubr.bf16.mxu0 %v547_v4  ;;  %515 = vmatprep.mubr.bf16.mxu1 %v548_v5  ;;  %v550_v11 = vld [vmem:[%s673_s0 + $0x28] sm:$0xff]   ;;  %v552_v13 = vld [vmem:[%s673_s0 + $0x30] sm:$0xff]   ;;  %v553_v14 = vld [vmem:[%s673_s0 + $0x18] sm:$0xff]  }
   0x6   :  { %v554_v15 = vld [vmem:[%s673_s0 + $0x38] sm:$0xff]   ;;  %v626_v16 = vld [vmem:[%s674_s2] ss:$0 sm:$0xff] }
   0x7   :  { %494 = vmatpush3.bf16.msra.mxu0 %v540_v1  ;;  %532 = vmatpush3.bf16.msra.mxu1 %v540_v1 }
   0x8   :  { %495 = vmatprep.subr.bf16.mxu0 %v541_v2  ;;  %525 = vmatprep.subr.bf16.mxu1 %v541_v2 }
   0xb   :  { %496 = vmatpush3.bf16.msra.mxu0 %v541_v2  ;;  %533 = vmatpush3.bf16.msra.mxu1 %v541_v2 }
   0xc   :  { %497 = vmatprep.subr.bf16.mxu0 %v542_v3  ;;  %526 = vmatprep.subr.bf16.mxu1 %v542_v3 }
   0xf   :  { %498 = vmatpush3.bf16.msra.mxu0 %v542_v3  ;;  %534 = vmatpush3.bf16.msra.mxu1 %v542_v3 }
  0x10   :  { %499 = vmatprep.subr.bf16.mxu0 %v543_v6  ;;  %527 = vmatprep.subr.bf16.mxu1 %v543_v6 }
  0x13   :  { %500 = vmatpush3.bf16.msra.mxu0 %v543_v6  ;;  %535 = vmatpush3.bf16.msra.mxu1 %v543_v6 }
  0x14   :  { %501 = vmatprep.subr.bf16.mxu0 %v544_v7  ;;  %528 = vmatprep.subr.bf16.mxu1 %v544_v7 }
  0x17   :  { %502 = vmatpush3.bf16.msra.mxu0 %v544_v7  ;;  %536 = vmatpush3.bf16.msra.mxu1 %v544_v7 }
  0x18   :  { %503 = vmatprep.subr.bf16.mxu0 %v545_v8  ;;  %529 = vmatprep.subr.bf16.mxu1 %v545_v8 }
  0x1b   :  { %504 = vmatpush3.bf16.msra.mxu0 %v545_v8  ;;  %537 = vmatpush3.bf16.msra.mxu1 %v545_v8 }
  0x1c   :  { %505 = vmatprep.subr.bf16.mxu0 %v546_v9  ;;  %530 = vmatprep.subr.bf16.mxu1 %v546_v9 }
  0x1f   :  { %506 = vmatpush3.bf16.msra.mxu0 %v546_v9  ;;  %538 = vmatpush3.bf16.msra.mxu1 %v546_v9 }
  0x22   :  { %508 = vmatmul.mubr.bf16.vlgmr.msra.gmra.mrb[0].mxu0 %v549_v10  ;;  %516 = vmatmul.mubr.bf16.vlgmr.msra.gmra.mrb[0].mxu1 %v550_v11 }
  0x23   :  { %511 = vmatprep.mubr.bf16.mxu0 %v551_v12  ;;  %519 = vmatprep.mubr.bf16.mxu1 %v552_v13 }
  0x2a   :  { %512 = vmatmul.mubr.bf16.gmra.mrb[4].mxu0 %v553_v14  ;;  %520 = vmatmul.mubr.bf16.gmra.mrb[4].mxu1 %v554_v15 }
  0xf5   :  { %v509_v17 = vpop.f32.mrb[0].mxu0  ;;  %v517_v18 = vpop.f32.mrb[0].mxu1 }
  0xf6   :  { %v193_v19 = vadd.f32 %v509_v17, %v626_v16  ;;  %v225_v20 = vadd.f32 %v517_v18, %v626_v16  ;;  %v184_v21 = vpop.f32.mrb[1].mxu0  ;;  %v216_v22 = vpop.f32.mrb[1].mxu1 }
  0xf7   :  { %v185_v23 = vadd.f32 %v626_v16, %v184_v21  ;;  %v217_v24 = vadd.f32 %v626_v16, %v216_v22  ;;  %v510_v25 = vpop.f32.mrb[2].mxu0  ;;  %v518_v26 = vpop.f32.mrb[2].mxu1 }
  0xf8   :  { %vm249_vm0 = vcmp.gt.f32.partialorder %v193_v19, 0.0  ;;  %v265_v27 = vmul.f32 0.2, %v193_v19  ;;  %vm257_vm1 = vcmp.gt.f32.partialorder %v225_v20, 0.0  ;;  %v273_v28 = vmul.f32 0.2, %v225_v20 }
  0xf9   :  { %vm247_vm2 = vcmp.gt.f32.partialorder %v185_v23, 0.0  ;;  %v263_v29 = vmul.f32 0.2, %v185_v23  ;;  %vm255_vm3 = vcmp.gt.f32.partialorder %v217_v24, 0.0  ;;  %v271_v30 = vmul.f32 0.2, %v217_v24 }
  0xfa   :  { %v196_v31 = vadd.f32 %v510_v25, %v626_v16  ;;  %v228_v32 = vadd.f32 %v518_v26, %v626_v16  ;;  %v187_v33 = vpop.f32.mrb[3].mxu0  ;;  %v219_v34 = vpop.f32.mrb[3].mxu1  ;;  %v281_v35 = vsel %vm249_vm0, %v193_v19, %v265_v27  ;;  %v289_v36 = vsel %vm257_vm1, %v225_v20, %v273_v28 }
  0xfb   :  { %v188_v37 = vadd.f32 %v626_v16, %v187_v33  ;;  %v220_v38 = vadd.f32 %v626_v16, %v219_v34  ;;  %v279_v43 = vsel %vm247_vm2, %v185_v23, %v263_v29  ;;  %v287_v44 = vsel %vm255_vm3, %v217_v24, %v271_v30 }
  0xfc   :  { %vm250_vm4 = vcmp.gt.f32.partialorder %v196_v31, 0.0  ;;  %v266_v39 = vmul.f32 0.2, %v196_v31  ;;  %vm258_vm5 = vcmp.gt.f32.partialorder %v228_v32, 0.0  ;;  %v274_v40 = vmul.f32 0.2, %v228_v32 }
  0xfd   :  { %vm248_vm6 = vcmp.gt.f32.partialorder %v188_v37, 0.0  ;;  %v264_v41 = vmul.f32 0.2, %v188_v37  ;;  %vm256_vm7 = vcmp.gt.f32.partialorder %v220_v38, 0.0  ;;  %v272_v42 = vmul.f32 0.2, %v220_v38 }
  0xfe   :  { %v282_v45 = vsel %vm250_vm4, %v196_v31, %v266_v39  ;;  %v290_v46 = vsel %vm258_vm5, %v228_v32, %v274_v40  ;;  %v513_v47 = vpop.f32.mrb[4].mxu0  ;;  %v521_v48 = vpop.f32.mrb[4].mxu1 }
  0xff   :  { %v436_v49 = vpack.c.bf16 %v282_v45, %v281_v35  ;;  %v456_v50 = vpack.c.bf16 %v290_v46, %v289_v36  ;;  %v280_v51 = vsel %vm248_vm6, %v188_v37, %v264_v41  ;;  %v288_v52 = vsel %vm256_vm7, %v220_v38, %v272_v42  ;;  %v200_v53 = vpop.f32.mrb[5].mxu0  ;;  %v232_v54 = vpop.f32.mrb[5].mxu1 }
 0x100   :  { %v431_v55 = vpack.c.bf16 %v280_v51, %v279_v43  ;;  %v451_v56 = vpack.c.bf16 %v288_v52, %v287_v44  ;;  %v209_v57 = vadd.f32 %v513_v47, %v626_v16  ;;  %v241_v58 = vadd.f32 %v521_v48, %v626_v16  ;;  %v514_v59 = vpop.f32.mrb[6].mxu0  ;;  %v522_v60 = vpop.f32.mrb[6].mxu1 }
 0x101   :  { %468 = vst [vmem:[%s675_s3 + $0x8] sm:$0xff] %v436_v49   ;;  %472 = vst [vmem:[%s675_s3 + $0x28] sm:$0xff] %v456_v50   ;;  %v201_v61 = vadd.f32 %v626_v16, %v200_v53  ;;  %v233_v62 = vadd.f32 %v626_v16, %v232_v54  ;;  %v212_v63 = vadd.f32 %v514_v59, %v626_v16  ;;  %v203_v1 = vpop.f32.mrb[7].mxu0  ;;  %v235_v2 = vpop.f32.mrb[7].mxu1 }
 0x102   :  { %v244_v0 = vadd.f32 %v522_v60, %v626_v16  ;;  %432 = vst [vmem:[%s675_s3] sm:$0xff] %v431_v55   ;;  %471 = vst [vmem:[%s675_s3 + $0x20] sm:$0xff] %v451_v56   ;;  %v269_v3 = vmul.f32 0.2, %v209_v57  ;;  %vm253_vm8 = vcmp.gt.f32.partialorder %v209_v57, 0.0  ;;  %v277_v4 = vmul.f32 0.2, %v241_v58 }
 0x103   :  { %vm261_vm9 = vcmp.gt.f32.partialorder %v241_v58, 0.0  ;;  %vm251_vm10 = vcmp.gt.f32.partialorder %v201_v61, 0.0  ;;  %vm254_vm11 = vcmp.gt.f32.partialorder %v212_v63, 0.0  ;;  %v270_v5 = vmul.f32 0.2, %v212_v63 }
 0x104   :  { %v267_v6 = vmul.f32 0.2, %v201_v61  ;;  %vm259_vm12 = vcmp.gt.f32.partialorder %v233_v62, 0.0  ;;  %vm262_vm13 = vcmp.gt.f32.partialorder %v244_v0, 0.0  ;;  %v278_v7 = vmul.f32 0.2, %v244_v0 }
 0x105   :  { %v285_v8 = vsel %vm253_vm8, %v209_v57, %v269_v3  ;;  %v286_v9 = vsel %vm254_vm11, %v212_v63, %v270_v5  ;;  %v204_v10 = vadd.f32 %v626_v16, %v203_v1  ;;  %v236_v11 = vadd.f32 %v626_v16, %v235_v2 }
 0x106   :  { %v293_v12 = vsel %vm261_vm9, %v241_v58, %v277_v4  ;;  %v275_v13 = vmul.f32 0.2, %v233_v62  ;;  %v446_v14 = vpack.c.bf16 %v286_v9, %v285_v8  ;;  %v294_v15 = vsel %vm262_vm13, %v244_v0, %v278_v7 }
 0x107   :  { %v466_v17 = vpack.c.bf16 %v294_v15, %v293_v12  ;;  %vm252_vm14 = vcmp.gt.f32.partialorder %v204_v10, 0.0  ;;  %v268_v18 = vmul.f32 0.2, %v204_v10  ;;  %vm260_vm15 = vcmp.gt.f32.partialorder %v236_v11, 0.0 }
 0x108   :  { %470 = vst [vmem:[%s675_s3 + $0x18] sm:$0xff] %v446_v14   ;;  %v276_v19 = vmul.f32 0.2, %v236_v11  ;;  %v283_v20 = vsel %vm251_vm10, %v201_v61, %v267_v6  ;;  %v291_v21 = vsel %vm259_vm12, %v233_v62, %v275_v13 }
 0x109   :  { %474 = vst [vmem:[%s675_s3 + $0x38] sm:$0xff] %v466_v17   ;;  %v284_v16 = vsel %vm252_vm14, %v204_v10, %v268_v18 }
 0x10a   :  { %v441_v22 = vpack.c.bf16 %v284_v16, %v283_v20  ;;  %v292_v23 = vsel %vm260_vm15, %v236_v11, %v276_v19 }
 0x10b   :  { %v461_v24 = vpack.c.bf16 %v292_v23, %v291_v21 }
 0x10c   :  { %469 = vst [vmem:[%s675_s3 + $0x10] sm:$0xff] %v441_v22  }
 0x10d   :  { %473 = vst [vmem:[%s675_s3 + $0x30] sm:$0xff] %v461_v24  }

// kernel: _lambda_.19
= control target key start
LH: loop header
LB: loop body
LE: loop exit
PB: predicated region body
PF: predicated region fallthrough
CT: control target
= control target key end

     0   :  { %v392_v20 = vmov 0.0   ;;  %vm252_vm0 = vcmask 1040384   ;;  %s496_s1 = inlined_call_operand.vmem [shape: bf16[256,128], index: 1, kind: input, shape index: {}]   ;;  %s497_s0 = inlined_call_operand.vmem [shape: bf16[32,256], index: 0, kind: input, shape index: {}]   ;;  %s498_s4 = inlined_call_operand.vmem [shape: f32[2,128], index: 4, kind: output, shape index: {1}]   ;;  %s499_s2 = inlined_call_operand.vmem [shape: f32[1,128], index: 2, kind: input, shape index: {}]   ;;  %s500_s3 = inlined_call_operand.vmem [shape: bf16[32,128], index: 3, kind: output, shape index: {0}]  }
   0x1   :  { %v370_v0 = vld [vmem:[%s496_s1 + $0x40] sm:$0xff]   ;;  %v372_v2 = vld [vmem:[%s496_s1 + $0x48] sm:$0xff]   ;;  %v374_v4 = vld [vmem:[%s496_s1 + $0x50] sm:$0xff]   ;;  %229 = vst [vmem:[%s498_s4] sm:$0x3] %v392_v20 }
   0x2   :  { %v371_v1 = vld [vmem:[%s496_s1] sm:$0xff]   ;;  %325 = vmatprep.subr.bf16.mxu0 %v370_v0  ;;  %353 = vmatprep.subr.bf16.mxu1 %v370_v0  ;;  %v373_v3 = vld [vmem:[%s496_s1 + $0x8] sm:$0xff]   ;;  %v375_v5 = vld [vmem:[%s496_s1 + $0x10] sm:$0xff]  }
   0x3   :  { %326 = vmatpush3.bf16.msra.mxu0 %v371_v1  ;;  %361 = vmatpush3.bf16.msra.mxu1 %v371_v1  ;;  %v376_v6 = vld [vmem:[%s496_s1 + $0x58] sm:$0xff]   ;;  %v378_v8 = vld [vmem:[%s496_s1 + $0x60] sm:$0xff]   ;;  %v380_v10 = vld [vmem:[%s496_s1 + $0x68] sm:$0xff]  }
   0x4   :  { %327 = vmatprep.subr.bf16.mxu0 %v372_v2  ;;  %354 = vmatprep.subr.bf16.mxu1 %v372_v2  ;;  %v377_v7 = vld [vmem:[%s496_s1 + $0x18] sm:$0xff]   ;;  %v379_v9 = vld [vmem:[%s496_s1 + $0x20] sm:$0xff]   ;;  %v381_v13 = vld [vmem:[%s496_s1 + $0x28] sm:$0xff]  }
   0x5   :  { %v388_v11 = vld [vmem:[%s497_s0 + $0x4] ss:$8 sps:$4 sm:$0xff]   ;;  %v391_v12 = vld [vmem:[%s497_s0 + $0x14] ss:$8 sps:$4 sm:$0xff]   ;;  %v386_v18 = vld [vmem:[%s497_s0] ss:$8 sps:$4 sm:$0xff]  }
   0x6   :  { %v382_v14 = vld [vmem:[%s496_s1 + $0x70] sm:$0xff]   ;;  %208 = vmatprep.mubr.bf16.mxu0 %v388_v11  ;;  %216 = vmatprep.mubr.bf16.mxu1 %v391_v12  ;;  %v384_v16 = vld [vmem:[%s496_s1 + $0x78] sm:$0xff]   ;;  %v285_v23 = vld [vmem:[%s499_s2] ss:$0 sm:$0xff] }
   0x7   :  { %328 = vmatpush3.bf16.msra.mxu0 %v373_v3  ;;  %362 = vmatpush3.bf16.msra.mxu1 %v373_v3  ;;  %v383_v15 = vld [vmem:[%s496_s1 + $0x30] sm:$0xff]   ;;  %v385_v17 = vld [vmem:[%s496_s1 + $0x38] sm:$0xff]  }
   0x8   :  { %329 = vmatprep.subr.bf16.mxu0 %v374_v4  ;;  %355 = vmatprep.subr.bf16.mxu1 %v374_v4  ;;  %v389_v19 = vld [vmem:[%s497_s0 + $0x10] ss:$8 sps:$4 sm:$0xff]   ;;  %v254_v62 = vld [vmem:[%s498_s4] sm:$0x3] }
   0xb   :  { %330 = vmatpush3.bf16.msra.mxu0 %v375_v5  ;;  %363 = vmatpush3.bf16.msra.mxu1 %v375_v5 }
   0xc   :  { %331 = vmatprep.subr.bf16.mxu0 %v376_v6  ;;  %356 = vmatprep.subr.bf16.mxu1 %v376_v6 }
   0xf   :  { %332 = vmatpush3.bf16.msra.mxu0 %v377_v7  ;;  %364 = vmatpush3.bf16.msra.mxu1 %v377_v7 }
  0x10   :  { %333 = vmatprep.subr.bf16.mxu0 %v378_v8  ;;  %357 = vmatprep.subr.bf16.mxu1 %v378_v8 }
  0x13   :  { %334 = vmatpush3.bf16.msra.mxu0 %v379_v9  ;;  %365 = vmatpush3.bf16.msra.mxu1 %v379_v9 }
  0x14   :  { %335 = vmatprep.subr.bf16.mxu0 %v380_v10  ;;  %358 = vmatprep.subr.bf16.mxu1 %v380_v10 }
  0x17   :  { %336 = vmatpush3.bf16.msra.mxu0 %v381_v13  ;;  %366 = vmatpush3.bf16.msra.mxu1 %v381_v13 }
  0x18   :  { %337 = vmatprep.subr.bf16.mxu0 %v382_v14  ;;  %359 = vmatprep.subr.bf16.mxu1 %v382_v14 }
  0x1b   :  { %338 = vmatpush3.bf16.msra.mxu0 %v383_v15  ;;  %367 = vmatpush3.bf16.msra.mxu1 %v383_v15 }
  0x1c   :  { %339 = vmatprep.subr.bf16.mxu0 %v384_v16  ;;  %360 = vmatprep.subr.bf16.mxu1 %v384_v16 }
  0x1f   :  { %340 = vmatpush3.bf16.msra.mxu0 %v385_v17  ;;  %368 = vmatpush3.bf16.msra.mxu1 %v385_v17 }
  0x22   :  { %209 = vmatmul.mubr.bf16.vlgmr.msra.gmra.mrb[0].mxu0 %v386_v18  ;;  %217 = vmatmul.mubr.bf16.vlgmr.msra.gmra.mrb[0].mxu1 %v389_v19 }
  0xf5   :  { %v341_v21 = vpop.f32.mrb[0].mxu0  ;;  %v347_v22 = vpop.f32.mrb[0].mxu1 }
  0xf6   :  { %v342_v24 = vpop.f32.mrb[1].mxu0  ;;  %v348_v25 = vpop.f32.mrb[1].mxu1 }
  0xf7   :  { %v343_v26 = vadd.f32 %v342_v24, %v341_v21  ;;  %v344_v27 = vpop.f32.mrb[2].mxu0  ;;  %v349_v28 = vadd.f32 %v348_v25, %v347_v22  ;;  %v350_v29 = vpop.f32.mrb[2].mxu1 }
  0xf8   :  { %v345_v30 = vpop.f32.mrb[3].mxu0  ;;  %v351_v31 = vpop.f32.mrb[3].mxu1 }
  0xf9   :  { %v211_v32 = vadd.f32 %v343_v26, %v285_v23  ;;  %v219_v33 = vadd.f32 %v349_v28, %v285_v23  ;;  %v346_v34 = vadd.f32 %v345_v30, %v344_v27  ;;  %v352_v35 = vadd.f32 %v351_v31, %v350_v29 }
  0xfb   :  { %v214_v36 = vadd.f32 %v346_v34, %v285_v23  ;;  %v222_v37 = vadd.f32 %v352_v35, %v285_v23  ;;  %v239_v38 = vmul.f32 %v211_v32, %v211_v32  ;;  %v241_v39 = vmul.f32 %v219_v33, %v219_v33 }
  0xfd   :  { %v230_v40 = vadd.f32 %v214_v36, %v211_v32  ;;  %v240_v41 = vmul.f32 %v214_v36, %v214_v36  ;;  %v317_v42 = vpack.c.bf16 %v214_v36, %v211_v32  ;;  %v322_v43 = vpack.c.bf16 %v222_v37, %v219_v33 }
  0xfe   :  { %v242_v47 = vmul.f32 %v222_v37, %v222_v37 }
  0xff   :  { %v243_v44 = vadd.f32 %v240_v41, %v239_v38  ;;  %318 = vst [vmem:[%s500_s3] sm:$0xff] %v317_v42   ;;  %v231_v45 = vadd.f32 %v230_v40, %v219_v33  ;;  %324 = vst [vmem:[%s500_s3 + $0x8] sm:$0xff] %v322_v43  }
 0x101   :  { %v232_v46 = vadd.f32 %v231_v45, %v222_v37  ;;  %v244_v48 = vadd.f32 %v243_v44, %v241_v39 }
 0x103   :  { %v233_v49 = vrot.slane %v232_v46, 4  ;;  %v245_v50 = vadd.f32 %v244_v48, %v242_v47 }
 0x105   :  { %v234_v51 = vadd.f32 %v233_v49, %v232_v46  ;;  %v246_v52 = vrot.slane %v245_v50, 4 }
 0x107   :  { %v235_v53 = vrot.slane %v234_v51, 2  ;;  %v247_v54 = vadd.f32 %v246_v52, %v245_v50 }
 0x109   :  { %v236_v55 = vadd.f32 %v235_v53, %v234_v51  ;;  %v248_v56 = vrot.slane %v247_v54, 2 }
 0x10b   :  { %v237_v57 = vrot.slane %v236_v55, 1  ;;  %v249_v58 = vadd.f32 %v248_v56, %v247_v54 }
 0x10d   :  { %v250_v59 = vrot.slane %v249_v58, 1  ;;  %v238_v60 = vadd.f32 %v237_v57, %v236_v55 }
 0x10f   :  { %v251_v61 = vadd.f32 %v250_v59, %v249_v58 }
 0x111   :  { %v253_v63 = vsel %vm252_vm0, %v238_v60, %v251_v61 }
 0x112   :  { %v255_v0 = vadd.f32 %v254_v62, %v253_v63 }
 0x114   :  { %256 = vst [vmem:[%s498_s4] sm:$0x3] %v255_v0 }

// kernel: _lambda_.20
= control target key start
LH: loop header
LB: loop body
LE: loop exit
PB: predicated region body
PF: predicated region fallthrough
CT: control target
= control target key end

     0   :  { %s148_s0 = inlined_call_operand.vmem [shape: bf16[32,128], index: 0, kind: input, shape index: {}]   ;;  %s149_s1 = inlined_call_operand.vmem [shape: f32[1,128], index: 1, kind: input, shape index: {}]   ;;  %s150_s2 = inlined_call_operand.vmem [shape: f32[1,128], index: 2, kind: input, shape index: {}]   ;;  %s151_s3 = inlined_call_operand.vmem [shape: bf16[32,128], index: 3, kind: output, shape index: {}]  }
   0x1   :  { %v91_v0 = vld [vmem:[%s148_s0] sm:$0xff]   ;;  %v108_v4 = vld [vmem:[%s148_s0 + $0x8] sm:$0xff]  }
   0x2   :  { %v80_v1 = vld [vmem:[%s149_s1] ss:$0 sm:$0xff]  ;;  %v92_v2 = vunpack.c.l.bf16 %v91_v0  ;;  %v93_v3 = vunpack.c.h.bf16 %v91_v0  ;;  %v96_v6 = vunpack.c.l.bf16 %v108_v4  ;;  %v97_v7 = vunpack.c.h.bf16 %v108_v4 }
   0x3   :  { %v81_v5 = vld [vmem:[%s150_s2] ss:$0 sm:$0xff] }
   0x4   :  { %v29_v8 = vmul.f32 %v92_v2, %v80_v1  ;;  %v30_v9 = vmul.f32 %v93_v3, %v80_v1  ;;  %v31_v10 = vmul.f32 %v96_v6, %v80_v1  ;;  %v32_v11 = vmul.f32 %v97_v7, %v80_v1 }
   0x6   :  { %v40_v12 = vadd.f32 %v81_v5, %v29_v8  ;;  %v41_v13 = vadd.f32 %v81_v5, %v30_v9  ;;  %v42_v14 = vadd.f32 %v81_v5, %v31_v10  ;;  %v43_v15 = vadd.f32 %v81_v5, %v32_v11 }
   0x8   :  { %vm44_vm0 = vcmp.gt.f32.partialorder %v40_v12, 0.0  ;;  %vm45_vm1 = vcmp.gt.f32.partialorder %v41_v13, 0.0  ;;  %v48_v16 = vmul.f32 0.2, %v40_v12  ;;  %v49_v17 = vmul.f32 0.2, %v41_v13 }
   0x9   :  { %vm46_vm2 = vcmp.gt.f32.partialorder %v42_v14, 0.0  ;;  %vm47_vm3 = vcmp.gt.f32.partialorder %v43_v15, 0.0  ;;  %v50_v18 = vmul.f32 0.2, %v42_v14  ;;  %v51_v19 = vmul.f32 0.2, %v43_v15 }
   0xa   :  { %v52_v20 = vsel %vm44_vm0, %v40_v12, %v48_v16  ;;  %v53_v21 = vsel %vm45_vm1, %v41_v13, %v49_v17 }
   0xb   :  { %v101_v22 = vpack.c.bf16 %v53_v21, %v52_v20  ;;  %v54_v23 = vsel %vm46_vm2, %v42_v14, %v50_v18  ;;  %v55_v24 = vsel %vm47_vm3, %v43_v15, %v51_v19 }
   0xc   :  { %v106_v25 = vpack.c.bf16 %v55_v24, %v54_v23 }
   0xd   :  { %102 = vst [vmem:[%s151_s3] sm:$0xff] %v101_v22  }
   0xe   :  { %109 = vst [vmem:[%s151_s3 + $0x8] sm:$0xff] %v106_v25  }

// kernel: _lambda_.21
= control target key start
LH: loop header
LB: loop body
LE: loop exit
PB: predicated region body
PF: predicated region fallthrough
CT: control target
= control target key end

     0   :  { %v450_v1 = vmov 0.0   ;;  %vm451_vm0 = vmmov 0   ;;  %vm327_vm1 = vcmask 1040384   ;;  %s580_s1 = inlined_call_operand.vmem [shape: bf16[384,128], index: 1, kind: input, shape index: {}]   ;;  %s581_s0 = inlined_call_operand.vmem [shape: bf16[8,384], index: 0, kind: input, shape index: {}]   ;;  %s582_s4 = inlined_call_operand.vmem [shape: f32[2,128], index: 4, kind: output, shape index: {1}]   ;;  %s583_s2 = inlined_call_operand.vmem [shape: f32[1,128], index: 2, kind: input, shape index: {}]   ;;  %s584_s3 = inlined_call_operand.vmem [shape: bf16[8,128], index: 3, kind: output, shape index: {0}]  }
   0x1   :  { %v423_v0 = vld [vmem:[%s580_s1 + $0x40] sm:$0xff]   ;;  %401 = vmatprep.subr.bf16.mxu1 %v450_v1  ;;  %417 = vmatprep.mubr.msk.bf16.mxu1 %vm451_vm0, %v450_v1  ;;  %v426_v4 = vld [vmem:[%s580_s1 + $0x48] sm:$0xff]   ;;  %v429_v7 = vld [vmem:[%s580_s1 + $0x50] sm:$0xff]   ;;  %313 = vst [vmem:[%s582_s4] sm:$0x3] %v450_v1 }
   0x2   :  { %v424_v2 = vld [vmem:[%s580_s1] sm:$0xff]   ;;  %370 = vmatprep.subr.bf16.mxu0 %v423_v0  ;;  %v427_v5 = vld [vmem:[%s580_s1 + $0x8] sm:$0xff]   ;;  %v430_v8 = vld [vmem:[%s580_s1 + $0x10] sm:$0xff]  }
   0x3   :  { %v425_v3 = vld [vmem:[%s580_s1 + $0x80] sm:$0xff]   ;;  %371 = vmatpush3.bf16.msra.mxu0 %v424_v2  ;;  %v428_v6 = vld [vmem:[%s580_s1 + $0x88] sm:$0xff]   ;;  %v431_v9 = vld [vmem:[%s580_s1 + $0x90] sm:$0xff]  }
   0x4   :  { %402 = vmatpush3.bf16.msra.mxu1 %v425_v3  ;;  %372 = vmatprep.subr.bf16.mxu0 %v426_v4  ;;  %v432_v10 = vld [vmem:[%s580_s1 + $0x58] sm:$0xff]   ;;  %v435_v13 = vld [vmem:[%s580_s1 + $0x60] sm:$0xff]   ;;  %v438_v16 = vld [vmem:[%s580_s1 + $0x68] sm:$0xff]  }
   0x5   :  { %403 = vmatprep.subr.bf16.mxu1 %v450_v1  ;;  %v433_v11 = vld [vmem:[%s580_s1 + $0x18] sm:$0xff]   ;;  %v436_v14 = vld [vmem:[%s580_s1 + $0x20] sm:$0xff]   ;;  %v439_v17 = vld [vmem:[%s580_s1 + $0x28] sm:$0xff]  }
   0x6   :  { %v434_v12 = vld [vmem:[%s580_s1 + $0x98] sm:$0xff]   ;;  %v437_v15 = vld [vmem:[%s580_s1 + $0xa0] sm:$0xff]   ;;  %v440_v18 = vld [vmem:[%s580_s1 + $0xa8] sm:$0xff]  }
   0x7   :  { %373 = vmatpush3.bf16.msra.mxu0 %v427_v5  ;;  %v441_v19 = vld [vmem:[%s580_s1 + $0x70] sm:$0xff]   ;;  %v17_v22 = vld [vmem:[%s581_s0] sm:$0xff]  ;;  %v444_v23 = vld [vmem:[%s580_s1 + $0x78] sm:$0xff]  }
   0x8   :  { %404 = vmatpush3.bf16.msra.mxu1 %v428_v6  ;;  %374 = vmatprep.subr.bf16.mxu0 %v429_v7  ;;  %v442_v20 = vld [vmem:[%s580_s1 + $0x30] sm:$0xff]   ;;  %v344_v24 = vcombine.high %v17_v22, %v17_v22  ;;  %v445_v25 = vld [vmem:[%s580_s1 + $0x38] sm:$0xff]   ;;  %v343_v27 = vcombine.low %v17_v22, %v17_v22  ;;  %v448_v28 = vld [vmem:[%s581_s0 + $0x8] ss:$0 sps:$4 sm:$0xff]  }
   0x9   :  { %405 = vmatprep.subr.bf16.mxu1 %v450_v1  ;;  %v443_v21 = vld [vmem:[%s580_s1 + $0xb0] sm:$0xff]   ;;  %v449_v26 = vld [vmem:[%s580_s1 + $0xb8] sm:$0xff]   ;;  %v342_v31 = vld [vmem:[%s583_s2] ss:$0 sm:$0xff] }
   0xa   :  { %261 = vmatprep.mubr.bf16.mxu0 %v344_v24  ;;  %v329_v55 = vld [vmem:[%s582_s4] sm:$0x3] }
   0xb   :  { %375 = vmatpush3.bf16.msra.mxu0 %v430_v8 }
   0xc   :  { %406 = vmatpush3.bf16.msra.mxu1 %v431_v9  ;;  %376 = vmatprep.subr.bf16.mxu0 %v432_v10 }
   0xd   :  { %407 = vmatprep.subr.bf16.mxu1 %v450_v1 }
   0xf   :  { %377 = vmatpush3.bf16.msra.mxu0 %v433_v11 }
  0x10   :  { %408 = vmatpush3.bf16.msra.mxu1 %v434_v12  ;;  %378 = vmatprep.subr.bf16.mxu0 %v435_v13 }
  0x11   :  { %409 = vmatprep.subr.bf16.mxu1 %v450_v1 }
  0x13   :  { %379 = vmatpush3.bf16.msra.mxu0 %v436_v14 }
  0x14   :  { %410 = vmatpush3.bf16.msra.mxu1 %v437_v15  ;;  %380 = vmatprep.subr.bf16.mxu0 %v438_v16 }
  0x15   :  { %411 = vmatprep.subr.bf16.mxu1 %v450_v1 }
  0x17   :  { %381 = vmatpush3.bf16.msra.mxu0 %v439_v17 }
  0x18   :  { %412 = vmatpush3.bf16.msra.mxu1 %v440_v18  ;;  %382 = vmatprep.subr.bf16.mxu0 %v441_v19 }
  0x19   :  { %413 = vmatprep.subr.bf16.mxu1 %v450_v1 }
  0x1b   :  { %383 = vmatpush3.bf16.msra.mxu0 %v442_v20 }
  0x1c   :  { %414 = vmatpush3.bf16.msra.mxu1 %v443_v21  ;;  %384 = vmatprep.subr.bf16.mxu0 %v444_v23 }
  0x1d   :  { %415 = vmatprep.subr.bf16.mxu1 %v450_v1 }
  0x1f   :  { %385 = vmatpush3.bf16.msra.mxu0 %v445_v25 }
  0x20   :  { %416 = vmatpush3.bf16.msra.mxu1 %v449_v26 }
  0x22   :  { %262 = vmatmul.mubr.bf16.vlgmr.msra.gmra.mrb[0].mxu0 %v343_v27 }
  0x23   :  { %418 = vmatmul.mubr.bf16.vlgmr.msra.gmra.mrb[0].mxu1 %v448_v28 }
  0xf5   :  { %v386_v29 = vpop.f32.mrb[0].mxu0 }
  0xf6   :  { %v387_v30 = vpop.f32.mrb[1].mxu0  ;;  %v303_v32 = vpop.f32.mrb[0].mxu1 }
  0xf7   :  { %v388_v33 = vadd.f32 %v387_v30, %v386_v29  ;;  %v389_v34 = vpop.f32.mrb[2].mxu0  ;;  %v419_v35 = vpop.f32.mrb[1].mxu1 }
  0xf8   :  { %v390_v36 = vpop.f32.mrb[3].mxu0  ;;  %v306_v37 = vpop.f32.mrb[2].mxu1 }
  0xf9   :  { %v264_v38 = vadd.f32 %v388_v33, %v342_v31  ;;  %v420_v39 = vpop.f32.mrb[3].mxu1 }
  0xfb   :  { %v304_v40 = vadd.f32 %v303_v32, %v264_v38 }
  0xfd   :  { %v314_v41 = vrot.slane %v304_v40, 4  ;;  %v320_v42 = vmul.f32 %v304_v40, %v304_v40  ;;  %v332_v43 = vpack.c.bf16 %v304_v40, %v304_v40 }
  0xff   :  { %v315_v44 = vadd.f32 %v314_v41, %v304_v40  ;;  %v321_v45 = vrot.slane %v320_v42, 4  ;;  %333 = vst [vmem:[%s584_s3] sm:$0xf] %v332_v43 }
 0x101   :  { %v316_v46 = vrot.slane %v315_v44, 2  ;;  %v322_v47 = vadd.f32 %v321_v45, %v320_v42 }
 0x103   :  { %v317_v48 = vadd.f32 %v316_v46, %v315_v44  ;;  %v323_v49 = vrot.slane %v322_v47, 2 }
 0x105   :  { %v318_v50 = vrot.slane %v317_v48, 1  ;;  %v324_v51 = vadd.f32 %v323_v49, %v322_v47 }
 0x107   :  { %v325_v52 = vrot.slane %v324_v51, 1  ;;  %v319_v53 = vadd.f32 %v318_v50, %v317_v48 }
 0x109   :  { %v326_v54 = vadd.f32 %v325_v52, %v324_v51 }
 0x10b   :  { %v328_v56 = vsel %vm327_vm1, %v319_v53, %v326_v54 }
 0x10c   :  { %v330_v57 = vadd.f32 %v329_v55, %v328_v56 }
 0x10e   :  { %331 = vst [vmem:[%s582_s4] sm:$0x3] %v330_v57 }

// kernel: _lambda_.22
= control target key start
LH: loop header
LB: loop body
LE: loop exit
PB: predicated region body
PF: predicated region fallthrough
CT: control target
= control target key end

     0   :  { %s75_s0 = inlined_call_operand.vmem [shape: bf16[8,128], index: 0, kind: input, shape index: {}]   ;;  %s76_s1 = inlined_call_operand.vmem [shape: f32[1,128], index: 1, kind: input, shape index: {}]   ;;  %s77_s2 = inlined_call_operand.vmem [shape: f32[1,128], index: 2, kind: input, shape index: {}]   ;;  %s78_s3 = inlined_call_operand.vmem [shape: bf16[8,128], index: 3, kind: output, shape index: {}]  }
   0x1   :  { %v14_v0 = vld [vmem:[%s75_s0] sm:$0xf] }
   0x2   :  { %v41_v1 = vld [vmem:[%s76_s1] ss:$0 sm:$0xff]  ;;  %v15_v2 = vunpack.c.l.bf16 %v14_v0 }
   0x3   :  { %v42_v3 = vld [vmem:[%s77_s2] ss:$0 sm:$0xff] }
   0x4   :  { %v23_v4 = vmul.f32 %v41_v1, %v15_v2 }
   0x6   :  { %v31_v5 = vadd.f32 %v42_v3, %v23_v4 }
   0x8   :  { %vm32_vm0 = vcmp.gt.f32.partialorder %v31_v5, 0.0  ;;  %v33_v6 = vmul.f32 0.2, %v31_v5 }
   0xa   :  { %v34_v7 = vsel %vm32_vm0, %v31_v5, %v33_v6 }
   0xb   :  { %v35_v8 = vpack.c.bf16 %v34_v7, %v34_v7 }
   0xd   :  { %36 = vst [vmem:[%s78_s3] sm:$0xf] %v35_v8 }

// kernel: _lambda_.17
= control target key start
LH: loop header
LB: loop body
LE: loop exit
PB: predicated region body
PF: predicated region fallthrough
CT: control target
= control target key end

     0   :  { %s350_s1 = inlined_call_operand.vmem [shape: bf16[256,128], index: 1, kind: input, shape index: {}]   ;;  %s351_s0 = inlined_call_operand.vmem [shape: bf16[8,256], index: 0, kind: input, shape index: {}]   ;;  %s352_s2 = inlined_call_operand.vmem [shape: f32[1,128], index: 2, kind: input, shape index: {}]   ;;  %s353_s3 = inlined_call_operand.vmem [shape: bf16[8,128], index: 3, kind: output, shape index: {}]  }
   0x1   :  { %v251_v0 = vld [vmem:[%s350_s1 + $0x40] sm:$0xff]   ;;  %v253_v2 = vld [vmem:[%s350_s1 + $0x48] sm:$0xff]   ;;  %v255_v4 = vld [vmem:[%s350_s1 + $0x50] sm:$0xff]  }
   0x2   :  { %v252_v1 = vld [vmem:[%s350_s1] sm:$0xff]   ;;  %229 = vmatprep.subr.bf16.mxu0 %v251_v0  ;;  %v254_v3 = vld [vmem:[%s350_s1 + $0x8] sm:$0xff]   ;;  %v256_v5 = vld [vmem:[%s350_s1 + $0x10] sm:$0xff]  }
   0x3   :  { %230 = vmatpush3.bf16.msra.mxu0 %v252_v1  ;;  %v257_v6 = vld [vmem:[%s350_s1 + $0x58] sm:$0xff]   ;;  %v259_v8 = vld [vmem:[%s350_s1 + $0x60] sm:$0xff]   ;;  %v261_v10 = vld [vmem:[%s350_s1 + $0x68] sm:$0xff]  }
   0x4   :  { %231 = vmatprep.subr.bf16.mxu0 %v253_v2  ;;  %v258_v7 = vld [vmem:[%s350_s1 + $0x18] sm:$0xff]   ;;  %v260_v9 = vld [vmem:[%s350_s1 + $0x20] sm:$0xff]   ;;  %v262_v13 = vld [vmem:[%s350_s1 + $0x28] sm:$0xff]  }
   0x5   :  { %v15_v11 = vld [vmem:[%s351_s0] sm:$0xff]  ;;  %v263_v14 = vld [vmem:[%s350_s1 + $0x70] sm:$0xff]   ;;  %v265_v16 = vld [vmem:[%s350_s1 + $0x78] sm:$0xff]  }
   0x6   :  { %v212_v12 = vcombine.high %v15_v11, %v15_v11  ;;  %v264_v15 = vld [vmem:[%s350_s1 + $0x30] sm:$0xff]   ;;  %v266_v17 = vld [vmem:[%s350_s1 + $0x38] sm:$0xff]   ;;  %v211_v18 = vcombine.low %v15_v11, %v15_v11  ;;  %v210_v20 = vld [vmem:[%s352_s2] ss:$0 sm:$0xff] }
   0x7   :  { %232 = vmatpush3.bf16.msra.mxu0 %v254_v3 }
   0x8   :  { %233 = vmatprep.subr.bf16.mxu0 %v255_v4  ;;  %190 = vmatprep.mubr.bf16.mxu0 %v212_v12 }
   0xb   :  { %234 = vmatpush3.bf16.msra.mxu0 %v256_v5 }
   0xc   :  { %235 = vmatprep.subr.bf16.mxu0 %v257_v6 }
   0xf   :  { %236 = vmatpush3.bf16.msra.mxu0 %v258_v7 }
  0x10   :  { %237 = vmatprep.subr.bf16.mxu0 %v259_v8 }
  0x13   :  { %238 = vmatpush3.bf16.msra.mxu0 %v260_v9 }
  0x14   :  { %239 = vmatprep.subr.bf16.mxu0 %v261_v10 }
  0x17   :  { %240 = vmatpush3.bf16.msra.mxu0 %v262_v13 }
  0x18   :  { %241 = vmatprep.subr.bf16.mxu0 %v263_v14 }
  0x1b   :  { %242 = vmatpush3.bf16.msra.mxu0 %v264_v15 }
  0x1c   :  { %243 = vmatprep.subr.bf16.mxu0 %v265_v16 }
  0x1f   :  { %244 = vmatpush3.bf16.msra.mxu0 %v266_v17 }
  0x22   :  { %191 = vmatmul.mubr.bf16.vlgmr.msra.gmra.mrb[0].mxu0 %v211_v18 }
  0xf5   :  { %v245_v19 = vpop.f32.mrb[0].mxu0 }
  0xf6   :  { %v246_v21 = vpop.f32.mrb[1].mxu0 }
  0xf7   :  { %v247_v22 = vadd.f32 %v246_v21, %v245_v19  ;;  %v248_v23 = vpop.f32.mrb[2].mxu0 }
  0xf8   :  { %v249_v24 = vpop.f32.mrb[3].mxu0 }
  0xf9   :  { %v193_v25 = vadd.f32 %v247_v22, %v210_v20 }
  0xfb   :  { %v198_v26 = vsub.f32 0.0, %v193_v25 }
  0xfd   :  { %v199_v27 = vmul.f32 1.442695, %v198_v26 }
  0xff   :  { %269 = vpow2.f32 %v199_v27 }
 0x109   :  { %v270_v28 = vpop.eup %269 }
 0x10a   :  { %v201_v29 = vadd.f32 1.0, %v270_v28 }
 0x10c   :  { %271 = vrcp.f32 %v201_v29 }
 0x116   :  { %v272_v30 = vpop.eup %271 }
 0x117   :  { %v204_v31 = vpack.c.bf16 %v272_v30, %v272_v30 }
 0x119   :  { %205 = vst [vmem:[%s353_s3] sm:$0xf] %v204_v31 }

// kernel: _lambda_.23
= control target key start
LH: loop header
LB: loop body
LE: loop exit
PB: predicated region body
PF: predicated region fallthrough
CT: control target
= control target key end

     0   :  { %v665_v35 = vmov 0.0   ;;  %vm666_vm0 = vmmov 0   ;;  %s822_s1 = inlined_call_operand.vmem [shape: bf16[640,128], index: 1, kind: input, shape index: {}]   ;;  %s823_s0 = inlined_call_operand.vmem [shape: bf16[8,640], index: 0, kind: input, shape index: {}]   ;;  %s824_s2 = inlined_call_operand.vmem [shape: f32[1,128], index: 2, kind: input, shape index: {}]   ;;  %s825_s3 = inlined_call_operand.vmem [shape: bf16[8,128], index: 3, kind: output, shape index: {}]  }
   0x1   :  { %v616_v0 = vld [vmem:[%s822_s1 + $0x40] sm:$0xff]   ;;  %v620_v4 = vld [vmem:[%s822_s1 + $0x48] sm:$0xff]   ;;  %v624_v8 = vld [vmem:[%s822_s1 + $0x50] sm:$0xff]  }
   0x2   :  { %v617_v1 = vld [vmem:[%s822_s1] sm:$0xff]   ;;  %541 = vmatprep.subr.bf16.mxu0 %v616_v0  ;;  %v621_v5 = vld [vmem:[%s822_s1 + $0x8] sm:$0xff]   ;;  %v625_v9 = vld [vmem:[%s822_s1 + $0x10] sm:$0xff]  }
   0x3   :  { %v618_v2 = vld [vmem:[%s822_s1 + $0xc0] sm:$0xff]   ;;  %542 = vmatpush3.bf16.msra.mxu0 %v617_v1  ;;  %v622_v6 = vld [vmem:[%s822_s1 + $0xc8] sm:$0xff]   ;;  %v626_v10 = vld [vmem:[%s822_s1 + $0xd0] sm:$0xff]  }
   0x4   :  { %v619_v3 = vld [vmem:[%s822_s1 + $0x80] sm:$0xff]   ;;  %563 = vmatprep.subr.bf16.mxu1 %v618_v2  ;;  %543 = vmatprep.subr.bf16.mxu0 %v620_v4  ;;  %v623_v7 = vld [vmem:[%s822_s1 + $0x88] sm:$0xff]   ;;  %v627_v11 = vld [vmem:[%s822_s1 + $0x90] sm:$0xff]  }
   0x5   :  { %564 = vmatpush3.bf16.msra.mxu1 %v619_v3  ;;  %v628_v12 = vld [vmem:[%s822_s1 + $0x58] sm:$0xff]   ;;  %v632_v16 = vld [vmem:[%s822_s1 + $0x60] sm:$0xff]   ;;  %v636_v20 = vld [vmem:[%s822_s1 + $0x68] sm:$0xff]  }
   0x6   :  { %565 = vmatprep.subr.bf16.mxu1 %v622_v6  ;;  %v629_v13 = vld [vmem:[%s822_s1 + $0x18] sm:$0xff]   ;;  %v633_v17 = vld [vmem:[%s822_s1 + $0x20] sm:$0xff]   ;;  %v637_v21 = vld [vmem:[%s822_s1 + $0x28] sm:$0xff]  }
   0x7   :  { %544 = vmatpush3.bf16.msra.mxu0 %v621_v5  ;;  %v630_v14 = vld [vmem:[%s822_s1 + $0xd8] sm:$0xff]   ;;  %v634_v18 = vld [vmem:[%s822_s1 + $0xe0] sm:$0xff]   ;;  %v638_v22 = vld [vmem:[%s822_s1 + $0xe8] sm:$0xff]  }
   0x8   :  { %545 = vmatprep.subr.bf16.mxu0 %v624_v8  ;;  %v631_v15 = vld [vmem:[%s822_s1 + $0x98] sm:$0xff]   ;;  %v635_v19 = vld [vmem:[%s822_s1 + $0xa0] sm:$0xff]   ;;  %v639_v23 = vld [vmem:[%s822_s1 + $0xa8] sm:$0xff]  }
   0x9   :  { %566 = vmatpush3.bf16.msra.mxu1 %v623_v7  ;;  %v640_v24 = vld [vmem:[%s822_s1 + $0x70] sm:$0xff]   ;;  %v644_v28 = vld [vmem:[%s822_s1 + $0x78] sm:$0xff]   ;;  %v15_v31 = vld [vmem:[%s823_s0] sm:$0xff] }
   0xa   :  { %567 = vmatprep.subr.bf16.mxu1 %v626_v10  ;;  %v641_v25 = vld [vmem:[%s822_s1 + $0x30] sm:$0xff]   ;;  %v645_v29 = vld [vmem:[%s822_s1 + $0x38] sm:$0xff]   ;;  %v496_v32 = vcombine.low %v15_v31, %v15_v31  ;;  %v497_v33 = vcombine.high %v15_v31, %v15_v31  ;;  %v16_v36 = vld [vmem:[%s823_s0 + $0x8] sm:$0xff] }
   0xb   :  { %546 = vmatpush3.bf16.msra.mxu0 %v625_v9  ;;  %v642_v26 = vld [vmem:[%s822_s1 + $0xf0] sm:$0xff]   ;;  %v646_v30 = vld [vmem:[%s822_s1 + $0xf8] sm:$0xff]   ;;  %v498_v37 = vcombine.low %v16_v36, %v16_v36  ;;  %v499_v38 = vcombine.high %v16_v36, %v16_v36  ;;  %v653_v39 = vld [vmem:[%s822_s1 + $0x100] sm:$0xff]  }
   0xc   :  { %547 = vmatprep.subr.bf16.mxu0 %v628_v12  ;;  %v643_v27 = vld [vmem:[%s822_s1 + $0xb0] sm:$0xff]   ;;  %v650_v34 = vld [vmem:[%s822_s1 + $0xb8] sm:$0xff]   ;;  %395 = vmatprep.mubr.bf16.mxu0 %v497_v33  ;;  %v654_v40 = vld [vmem:[%s822_s1 + $0x108] sm:$0xff]  }
   0xd   :  { %568 = vmatpush3.bf16.msra.mxu1 %v627_v11  ;;  %435 = vmatprep.mubr.bf16.mxu1 %v499_v38  ;;  %v655_v41 = vld [vmem:[%s822_s1 + $0x110] sm:$0xff]   ;;  %v656_v42 = vld [vmem:[%s822_s1 + $0x118] sm:$0xff]   ;;  %v657_v43 = vld [vmem:[%s822_s1 + $0x120] sm:$0xff]  }
   0xe   :  { %569 = vmatprep.subr.bf16.mxu1 %v630_v14  ;;  %v658_v44 = vld [vmem:[%s822_s1 + $0x128] sm:$0xff]   ;;  %v659_v45 = vld [vmem:[%s822_s1 + $0x130] sm:$0xff]   ;;  %v660_v46 = vld [vmem:[%s822_s1 + $0x138] sm:$0xff]  }
   0xf   :  { %548 = vmatpush3.bf16.msra.mxu0 %v629_v13  ;;  %v649_v47 = vld [vmem:[%s823_s0 + $0x10] ss:$0 sps:$4 sm:$0xff]   ;;  %v495_v49 = vld [vmem:[%s824_s2] ss:$0 sm:$0xff] }
  0x10   :  { %549 = vmatprep.subr.bf16.mxu0 %v632_v16 }
  0x11   :  { %570 = vmatpush3.bf16.msra.mxu1 %v631_v15 }
  0x12   :  { %571 = vmatprep.subr.bf16.mxu1 %v634_v18 }
  0x13   :  { %550 = vmatpush3.bf16.msra.mxu0 %v633_v17 }
  0x14   :  { %551 = vmatprep.subr.bf16.mxu0 %v636_v20 }
  0x15   :  { %572 = vmatpush3.bf16.msra.mxu1 %v635_v19 }
  0x16   :  { %573 = vmatprep.subr.bf16.mxu1 %v638_v22 }
  0x17   :  { %552 = vmatpush3.bf16.msra.mxu0 %v637_v21 }
  0x18   :  { %553 = vmatprep.subr.bf16.mxu0 %v640_v24 }
  0x19   :  { %574 = vmatpush3.bf16.msra.mxu1 %v639_v23 }
  0x1a   :  { %575 = vmatprep.subr.bf16.mxu1 %v642_v26 }
  0x1b   :  { %554 = vmatpush3.bf16.msra.mxu0 %v641_v25 }
  0x1c   :  { %555 = vmatprep.subr.bf16.mxu0 %v644_v28 }
  0x1d   :  { %576 = vmatpush3.bf16.msra.mxu1 %v643_v27 }
  0x1e   :  { %577 = vmatprep.subr.bf16.mxu1 %v646_v30 }
  0x1f   :  { %556 = vmatpush3.bf16.msra.mxu0 %v645_v29 }
  0x20   :  { %594 = vmatprep.subr.bf16.mxu0 %v665_v35 }
  0x21   :  { %578 = vmatpush3.bf16.msra.mxu1 %v650_v34 }
  0x22   :  { %396 = vmatmul.mubr.bf16.vlgmr.msra.gmra.mrb[0].mxu0 %v496_v32 }
  0x23   :  { %595 = vmatpush3.bf16.msra.mxu0 %v653_v39  ;;  %610 = vmatprep.mubr.msk.bf16.mxu0 %vm666_vm0, %v665_v35 }
  0x24   :  { %436 = vmatmul.mubr.bf16.vlgmr.msra.gmra.mrb[0].mxu1 %v498_v37  ;;  %596 = vmatprep.subr.bf16.mxu0 %v665_v35 }
  0x27   :  { %597 = vmatpush3.bf16.msra.mxu0 %v654_v40 }
  0x28   :  { %598 = vmatprep.subr.bf16.mxu0 %v665_v35 }
  0x2b   :  { %599 = vmatpush3.bf16.msra.mxu0 %v655_v41 }
  0x2c   :  { %600 = vmatprep.subr.bf16.mxu0 %v665_v35 }
  0x2f   :  { %601 = vmatpush3.bf16.msra.mxu0 %v656_v42 }
  0x30   :  { %602 = vmatprep.subr.bf16.mxu0 %v665_v35 }
  0x33   :  { %603 = vmatpush3.bf16.msra.mxu0 %v657_v43 }
  0x34   :  { %604 = vmatprep.subr.bf16.mxu0 %v665_v35 }
  0x37   :  { %605 = vmatpush3.bf16.msra.mxu0 %v658_v44 }
  0x38   :  { %606 = vmatprep.subr.bf16.mxu0 %v665_v35 }
  0x3b   :  { %607 = vmatpush3.bf16.msra.mxu0 %v659_v45 }
  0x3c   :  { %608 = vmatprep.subr.bf16.mxu0 %v665_v35 }
  0x3f   :  { %609 = vmatpush3.bf16.msra.mxu0 %v660_v46 }
  0x42   :  { %611 = vmatmul.mubr.bf16.vlgmr.msra.gmra.mrb[4].mxu0 %v649_v47 }
  0xf5   :  { %v557_v48 = vpop.f32.mrb[0].mxu0 }
  0xf6   :  { %v558_v50 = vpop.f32.mrb[1].mxu0 }
  0xf7   :  { %v559_v51 = vadd.f32 %v558_v50, %v557_v48  ;;  %v560_v52 = vpop.f32.mrb[2].mxu0  ;;  %v579_v53 = vpop.f32.mrb[0].mxu1 }
  0xf8   :  { %v561_v54 = vpop.f32.mrb[3].mxu0  ;;  %v580_v55 = vpop.f32.mrb[1].mxu1 }
  0xf9   :  { %v398_v56 = vadd.f32 %v559_v51, %v495_v49  ;;  %v581_v57 = vadd.f32 %v580_v55, %v579_v53  ;;  %v582_v58 = vpop.f32.mrb[2].mxu1 }
  0xfa   :  { %v583_v59 = vpop.f32.mrb[3].mxu1 }
  0xfb   :  { %v438_v60 = vadd.f32 %v581_v57, %v398_v56 }
 0x115   :  { %v477_v61 = vpop.f32.mrb[4].mxu0 }
 0x116   :  { %v478_v62 = vadd.f32 %v477_v61, %v438_v60  ;;  %v612_v63 = vpop.f32.mrb[5].mxu0 }
 0x117   :  { %v480_v0 = vpop.f32.mrb[6].mxu0 }
 0x118   :  { %v483_v1 = vsub.f32 0.0, %v478_v62  ;;  %v613_v2 = vpop.f32.mrb[7].mxu0 }
 0x11a   :  { %v484_v3 = vmul.f32 1.442695, %v483_v1 }
 0x11c   :  { %661 = vpow2.f32 %v484_v3 }
 0x126   :  { %v662_v4 = vpop.eup %661 }
 0x127   :  { %v486_v5 = vadd.f32 1.0, %v662_v4 }
 0x129   :  { %663 = vrcp.f32 %v486_v5 }
 0x133   :  { %v664_v6 = vpop.eup %663 }
 0x134   :  { %v489_v7 = vpack.c.bf16 %v664_v6, %v664_v6 }
 0x136   :  { %490 = vst [vmem:[%s825_s3] sm:$0xf] %v489_v7 }

</bundles_post_ra>
